<compile_context>
chip_gen: v5e
topology: v5e:2x2
jax: 0.10.0
libtpu: 0.0.40
codegen_flags: <defaults>
</compile_context>

<pallas_src>
import functools

import jax
import jax.numpy as jnp
from jax.experimental import pallas as pl
from jax.experimental.pallas import tpu as pltpu

_LANE = 128


def _round_up(n, m):
    return ((n + m - 1) // m) * m


# -----------------------------------------------------------------------------
# Weight packing: PyTorch (4H, In) "[i|f|g|o]" layout -> transposed (In_pad, 4*Hp)
# bf16, with every gate slab padded to Hp (multiple of 128) lanes so in-kernel gate
# slices are lane-tile aligned. Padded rows/cols are zero, so padded hidden units
# stay exactly 0 through the recurrence and never affect real units.
# -----------------------------------------------------------------------------
def _pack_weight(w, in_pad, hp):
    h4, in_dim = w.shape
    h = h4 // 4
    w = w.reshape(4, h, in_dim).transpose(2, 0, 1)               # (in, 4, h)
    w = jnp.pad(w, ((0, in_pad - in_dim), (0, 0), (0, hp - h)))  # zero padding
    return w.reshape(in_pad, 4 * hp).astype(jnp.bfloat16)


def _pack_bias(b_ih, b_hh, hp):
    h4 = b_ih.shape[0]
    h = h4 // 4
    b = (b_ih + b_hh).astype(jnp.float32).reshape(4, h)
    b = jnp.pad(b, ((0, 0), (0, hp - h)))
    return b.reshape(1, 4 * hp)


# -----------------------------------------------------------------------------
# Fused two-layer LSTM kernel. One grid step = one (batch tile, time block).
# -----------------------------------------------------------------------------
def _fused_lstm_kernel(gx1_ref, whh1_ref, wih2_ref, whh2_ref, b2_ref,
                       out_ref, h1_sc, c1_sc, h2_sc, c2_sc, h1blk_sc):
    tt, bblk, _ = gx1_ref.shape

    # (Re)initialize the carried recurrent state at the start of every batch tile's
    # time sweep (the time axis is the innermost, sequential grid axis).
    @pl.when(pl.program_id(1) == 0)
    def _():
        h1_sc[...] = jnp.zeros_like(h1_sc)
        c1_sc[...] = jnp.zeros_like(c1_sc)
        h2_sc[...] = jnp.zeros_like(h2_sc)
        c2_sc[...] = jnp.zeros_like(c2_sc)

    def cell(gates, c_prev):
        # gates: (bblk, 4*hp) with lane-aligned [i|f|g|o] slabs; all math in f32.
        hp = c_prev.shape[-1]
        i_g = jax.nn.sigmoid(gates[:, 0 * hp:1 * hp])
        f_g = jax.nn.sigmoid(gates[:, 1 * hp:2 * hp])
        g_g = jnp.tanh(gates[:, 2 * hp:3 * hp])
        o_g = jax.nn.sigmoid(gates[:, 3 * hp:4 * hp])
        c_new = f_g * c_prev + i_g * g_g
        return o_g * jnp.tanh(c_new), c_new

    # Hoist grid-invariant weight loads out of the unrolled time loops.
    whh1 = whh1_ref[...]
    wih2 = wih2_ref[...]
    whh2 = whh2_ref[...]
    b2 = b2_ref[...]
    gx1 = gx1_ref[...]              # (tt, bblk, 4*Hp1) f32, x-projection precomputed

    # ---- layer 1 recurrence over the time block (only h @ W_hh1 per step) ----
    h1 = h1_sc[...]
    c1 = c1_sc[...]
    for t in range(tt):
        gates = gx1[t] + jnp.dot(h1.astype(jnp.bfloat16), whh1,
                                 preferred_element_type=jnp.float32)
        h1, c1 = cell(gates, c1)
        h1blk_sc[t * bblk:(t + 1) * bblk, :] = h1   # stage for layer-2 projection
    h1_sc[...] = h1
    c1_sc[...] = c1

    # ---- layer 2 input projection, batched over the whole block (M = tt*bblk) ----
    # (nn.Dropout between the layers is identity in eval mode.)
    gx2 = jnp.dot(h1blk_sc[...].astype(jnp.bfloat16), wih2,
                  preferred_element_type=jnp.float32) + b2        # (tt*bblk, 4*Hp2)

    # ---- layer 2 recurrence over the time block ----
    h2 = h2_sc[...]
    c2 = c2_sc[...]
    for t in range(tt):
        gates = gx2[t * bblk:(t + 1) * bblk, :] + jnp.dot(
            h2.astype(jnp.bfloat16), whh2, preferred_element_type=jnp.float32)
        h2, c2 = cell(gates, c2)
        out_ref[t] = h2.astype(out_ref.dtype)       # lane-dense (bblk, Hp2) store
    h2_sc[...] = h2
    c2_sc[...] = c2


def _fused_lstm_encoder(x_tm, params, block_t, block_b):
    """x_tm: (T, B, Din) f32 time-major. Returns (T, B, Din) f32."""
    T, B, Din = x_tm.shape
    p1, p2 = params["lstm1"], params["lstm2"]
    H = p1["w_hh"].shape[1]

    hp1 = _round_up(H, _LANE)      # layer-1 hidden, padded to a lane multiple
    hp2 = _round_up(Din, _LANE)    # layer-2 hidden (== input_size), padded

    assert T % block_t == 0 and B % block_b == 0

    # Packed / padded bf16 weights, f32 biases.
    wih1 = _pack_weight(p1["w_ih"], Din, hp1)        # (Din, 4*hp1)
    whh1 = _pack_weight(p1["w_hh"], hp1, hp1)        # (hp1, 4*hp1)
    b1 = _pack_bias(p1["b_ih"], p1["b_hh"], hp1)     # (1, 4*hp1)
    wih2 = _pack_weight(p2["w_ih"], hp1, hp2)        # (hp1, 4*hp2)
    whh2 = _pack_weight(p2["w_hh"], hp2, hp2)        # (hp2, 4*hp2)
    b2 = _pack_bias(p2["b_ih"], p2["b_hh"], hp2)     # (1, 4*hp2)

    # Hoisted layer-1 input projection: one big (T*B, Din) x (Din, 4*hp1) bf16 matmul
    # with f32 accumulation (MXU, M = T*B), bias folded in.
    x2d = x_tm.reshape(T * B, Din).astype(jnp.bfloat16)
    gx1 = jnp.dot(x2d, wih1, preferred_element_type=jnp.float32) + b1
    gx1 = gx1.reshape(T, B, 4 * hp1)

    grid = (B // block_b, T // block_t)

    out_padded = pl.pallas_call(
        _fused_lstm_kernel,
        out_shape=jax.ShapeDtypeStruct((T, B, hp2), jnp.float32),
        grid_spec=pltpu.PrefetchScalarGridSpec(
            num_scalar_prefetch=0,
            grid=grid,
            in_specs=[
                # Precomputed layer-1 gate inputs: tiled over (batch tile, time block).
                pl.BlockSpec((block_t, block_b, 4 * hp1), lambda b, t: (t, b, 0)),
                # Grid-invariant weights / bias: constant index_map -> fetched once.
                pl.BlockSpec((hp1, 4 * hp1), lambda b, t: (0, 0)),
                pl.BlockSpec((hp1, 4 * hp2), lambda b, t: (0, 0)),
                pl.BlockSpec((hp2, 4 * hp2), lambda b, t: (0, 0)),
                pl.BlockSpec((1, 4 * hp2), lambda b, t: (0, 0)),
            ],
            out_specs=pl.BlockSpec((block_t, block_b, hp2), lambda b, t: (t, b, 0)),
            scratch_shapes=[
                pltpu.VMEM((block_b, hp1), jnp.float32),             # h1 carry
                pltpu.VMEM((block_b, hp1), jnp.float32),             # c1 carry
                pltpu.VMEM((block_b, hp2), jnp.float32),             # h2 carry
                pltpu.VMEM((block_b, hp2), jnp.float32),             # c2 carry
                pltpu.VMEM((block_t * block_b, hp1), jnp.float32),   # layer-1 block outs
            ],
        ),
        compiler_params=pltpu.CompilerParams(
            # Batch tiles are independent (v7x: sharded across the 2 TensorCores with
            # private scratch); the time axis carries (h, c) state and must stay
            # sequential.
            dimension_semantics=("parallel", "arbitrary"),
        ),
    )(gx1, whh1, wih2, whh2, b2)

    return out_padded[:, :, :Din]


@functools.partial(jax.jit, static_argnames=("block_t", "block_b"))
def lstm_encoder_forward(x, params, *, block_t=None, block_b=None):
    """x: (B, T, input_size) -> (B, T, input_size). Dropout is identity (eval)."""
    B, T, _ = x.shape
    if block_t is None:
        block_t = max(d for d in range(1, min(T, 32) + 1) if T % d == 0)
    if block_b is None:
        block_b = B   # on v7x with large B, pick B // 2 (multiple of 8) for both TCs
    x_tm = jnp.transpose(x, (1, 0, 2))                   # single transpose in
    out_tm = _fused_lstm_encoder(x_tm, params, block_t, block_b)
    return jnp.transpose(out_tm, (1, 0, 2))              # single transpose out


def init_lstm_encoder_params(key, input_size, hidden_size):
    """Deterministic parameter init matching nn.LSTM shapes (uniform +-1/sqrt(H))."""
    def init_layer(key, in_sz, hid_sz):
        k = 1.0 / jnp.sqrt(jnp.float32(hid_sz))
        ks = jax.random.split(key, 4)
        return dict(
            w_ih=jax.random.uniform(ks[0], (4 * hid_sz, in_sz), jnp.float32, -k, k),
            w_hh=jax.random.uniform(ks[1], (4 * hid_sz, hid_sz), jnp.float32, -k, k),
            b_ih=jax.random.uniform(ks[2], (4 * hid_sz,), jnp.float32, -k, k),
            b_hh=jax.random.uniform(ks[3], (4 * hid_sz,), jnp.float32, -k, k),
        )

    k1, k2 = jax.random.split(key)
    return dict(
        lstm1=init_layer(k1, input_size, hidden_size),
        lstm2=init_layer(k2, hidden_size, input_size),
    )


# ---------------- pure-JAX reference (mirrors bf16-operand / f32-accum matmuls) ----
def _lstm_layer_ref(x_tm, w_ih, w_hh, b_ih, b_hh):
    _, B, _ = x_tm.shape
    H = w_hh.shape[1]
    wih_b = w_ih.astype(jnp.bfloat16).T     # (in, 4H)
    whh_b = w_hh.astype(jnp.bfloat16).T     # (H, 4H)
    bias = (b_ih + b_hh).astype(jnp.float32)

    def step(carry, x_t):
        h, c = carry
        gates = (jnp.dot(x_t.astype(jnp.bfloat16), wih_b,
                         preferred_element_type=jnp.float32)
                 + jnp.dot(h.astype(jnp.bfloat16), whh_b,
                           preferred_element_type=jnp.float32)
                 + bias)
        i, f, g, o = jnp.split(gates, 4, axis=-1)
        c = jax.nn.sigmoid(f) * c + jax.nn.sigmoid(i) * jnp.tanh(g)
        h = jax.nn.sigmoid(o) * jnp.tanh(c)
        return (h, c), h

    init = (jnp.zeros((B, H), jnp.float32), jnp.zeros((B, H), jnp.float32))
    _, hs = jax.lax.scan(step, init, x_tm)
    return hs


def _encoder_ref(x, params):
    x_tm = jnp.transpose(x, (1, 0, 2))
    p1, p2 = params["lstm1"], params["lstm2"]
    h1 = _lstm_layer_ref(x_tm, p1["w_ih"], p1["w_hh"], p1["b_ih"], p1["b_hh"])
    h2 = _lstm_layer_ref(h1, p2["w_ih"], p2["w_hh"], p2["b_ih"], p2["b_hh"])
    return jnp.transpose(h2, (1, 0, 2))


if __name__ == "__main__":
    B, T = 2, 8
    INPUT_SIZE, HIDDEN_SIZE = 16, 32
    DROPOUT_RATE = 0.1  # identity in eval mode

    key = jax.random.PRNGKey(0)
    k_x, k_p = jax.random.split(key)
    x = jax.random.normal(k_x, (B, T, INPUT_SIZE), dtype=jnp.float32)
    params = init_lstm_encoder_params(k_p, INPUT_SIZE, HIDDEN_SIZE)

    # block_t=4 -> time grid of length 2, exercising the cross-block state carry.
    out = lstm_encoder_forward(x, params, block_t=4)
    out = jax.block_until_ready(out)

    ref = jax.block_until_ready(_encoder_ref(x, params))
    assert out.shape == (B, T, INPUT_SIZE), out.shape
    max_err = float(jnp.max(jnp.abs(out - ref)))
    assert max_err < 5e-3, f"max abs error vs reference: {max_err}"

    print("KERNEL_OK")
</pallas_src>

<mosaic_0001>
module attributes {stable_mosaic.version = 11 : i64} {
  func.func @_fused_lstm_kernel(%arg0: i32, %arg1: i32, %arg2: memref<4x2x512xf32, #tpu.memory_space<vmem>>, %arg3: memref<128x512xbf16, #tpu.memory_space<vmem>>, %arg4: memref<128x512xbf16, #tpu.memory_space<vmem>>, %arg5: memref<128x512xbf16, #tpu.memory_space<vmem>>, %arg6: memref<1x512xf32, #tpu.memory_space<vmem>>, %arg7: memref<4x2x128xf32, #tpu.memory_space<vmem>>, %arg8: memref<2x128xf32, #tpu.memory_space<vmem>>, %arg9: memref<2x128xf32, #tpu.memory_space<vmem>>, %arg10: memref<2x128xf32, #tpu.memory_space<vmem>>, %arg11: memref<2x128xf32, #tpu.memory_space<vmem>>, %arg12: memref<8x128xf32, #tpu.memory_space<vmem>>) attributes {dimension_semantics = [#tpu.dimension_semantics<parallel>, #tpu.dimension_semantics<arbitrary>], iteration_bounds = array<i64: 1, 2>, scalar_prefetch = 0 : i64, scratch_operands = 5 : i64, tpu.core_type = #tpu.core_type<tc>, window_params = [{transform_indices = @transform_0, window_bounds = array<i64: 4, 2, 512>}, {pipeline_mode = #tpu.pipeline_mode<synchronous>, transform_indices = @transform_1, window_bounds = array<i64: 128, 512>}, {pipeline_mode = #tpu.pipeline_mode<synchronous>, transform_indices = @transform_2, window_bounds = array<i64: 128, 512>}, {pipeline_mode = #tpu.pipeline_mode<synchronous>, transform_indices = @transform_3, window_bounds = array<i64: 128, 512>}, {pipeline_mode = #tpu.pipeline_mode<synchronous>, transform_indices = @transform_4, window_bounds = array<i64: 1, 512>}, {transform_indices = @transform_5, window_bounds = array<i64: 4, 2, 128>}]} {
    %c0_i32 = arith.constant 0 : i32
    %0 = arith.cmpi eq, %arg1, %c0_i32 : i32
    %1 = arith.extui %0 : i1 to i32
    %c0_i32_0 = arith.constant 0 : i32
    %2 = arith.cmpi ne, %1, %c0_i32_0 : i32
    scf.if %2 {
      %cst_76 = arith.constant 0.000000e+00 : f32
      %273 = vector.broadcast %cst_76 : f32 to vector<2x128xf32>
      %c0_77 = arith.constant 0 : index
      %c0_78 = arith.constant 0 : index
      %274 = vector.load %arg8[%c0_77, %c0_78] : memref<2x128xf32, #tpu.memory_space<vmem>>, vector<2x128xf32>
      tpu.vector_store %arg8[%c0_77, %c0_78], %273 {strides = array<i32>} : memref<2x128xf32, #tpu.memory_space<vmem>>, vector<2x128xf32>,
      %cst_79 = arith.constant 0.000000e+00 : f32
      %275 = vector.broadcast %cst_79 : f32 to vector<2x128xf32>
      %c0_80 = arith.constant 0 : index
      %c0_81 = arith.constant 0 : index
      %276 = vector.load %arg9[%c0_80, %c0_81] : memref<2x128xf32, #tpu.memory_space<vmem>>, vector<2x128xf32>
      tpu.vector_store %arg9[%c0_80, %c0_81], %275 {strides = array<i32>} : memref<2x128xf32, #tpu.memory_space<vmem>>, vector<2x128xf32>,
      %cst_82 = arith.constant 0.000000e+00 : f32
      %277 = vector.broadcast %cst_82 : f32 to vector<2x128xf32>
      %c0_83 = arith.constant 0 : index
      %c0_84 = arith.constant 0 : index
      %278 = vector.load %arg10[%c0_83, %c0_84] : memref<2x128xf32, #tpu.memory_space<vmem>>, vector<2x128xf32>
      tpu.vector_store %arg10[%c0_83, %c0_84], %277 {strides = array<i32>} : memref<2x128xf32, #tpu.memory_space<vmem>>, vector<2x128xf32>,
      %cst_85 = arith.constant 0.000000e+00 : f32
      %279 = vector.broadcast %cst_85 : f32 to vector<2x128xf32>
      %c0_86 = arith.constant 0 : index
      %c0_87 = arith.constant 0 : index
      %280 = vector.load %arg11[%c0_86, %c0_87] : memref<2x128xf32, #tpu.memory_space<vmem>>, vector<2x128xf32>
      tpu.vector_store %arg11[%c0_86, %c0_87], %279 {strides = array<i32>} : memref<2x128xf32, #tpu.memory_space<vmem>>, vector<2x128xf32>,
    } else {
    }
    %c0 = arith.constant 0 : index
    %c0_1 = arith.constant 0 : index
    %3 = vector.load %arg3[%c0, %c0_1] : memref<128x512xbf16, #tpu.memory_space<vmem>>, vector<128x512xbf16>
    %c0_2 = arith.constant 0 : index
    %c0_3 = arith.constant 0 : index
    %4 = vector.load %arg4[%c0_2, %c0_3] : memref<128x512xbf16, #tpu.memory_space<vmem>>, vector<128x512xbf16>
    %c0_4 = arith.constant 0 : index
    %c0_5 = arith.constant 0 : index
    %5 = vector.load %arg5[%c0_4, %c0_5] : memref<128x512xbf16, #tpu.memory_space<vmem>>, vector<128x512xbf16>
    %c0_6 = arith.constant 0 : index
    %c0_7 = arith.constant 0 : index
    %6 = vector.load %arg6[%c0_6, %c0_7] : memref<1x512xf32, #tpu.memory_space<vmem>>, vector<1x512xf32>
    %c0_8 = arith.constant 0 : index
    %c0_9 = arith.constant 0 : index
    %c0_10 = arith.constant 0 : index
    %7 = vector.load %arg2[%c0_8, %c0_9, %c0_10] : memref<4x2x512xf32, #tpu.memory_space<vmem>>, vector<4x2x512xf32>
    %c0_11 = arith.constant 0 : index
    %c0_12 = arith.constant 0 : index
    %8 = vector.load %arg8[%c0_11, %c0_12] : memref<2x128xf32, #tpu.memory_space<vmem>>, vector<2x128xf32>
    %c0_13 = arith.constant 0 : index
    %c0_14 = arith.constant 0 : index
    %9 = vector.load %arg9[%c0_13, %c0_14] : memref<2x128xf32, #tpu.memory_space<vmem>>, vector<2x128xf32>
    %10 = vector.extract_strided_slice %7 {offsets = [0, 0, 0], sizes = [1, 2, 512], strides = [1, 1, 1]} : vector<4x2x512xf32> to vector<1x2x512xf32>
    %11 = vector.shape_cast %10 : vector<1x2x512xf32> to vector<2x512xf32>
    %12 = arith.truncf %8 : vector<2x128xf32> to vector<2x128xbf16>
    %cst = arith.constant dense<0.000000e+00> : vector<2x512xf32>
    %13 = tpu.matmul %12, %3, %cst {dimension_numbers = #tpu.dot_dimension_numbers<[1], [0], [0], [1], [0, 0, 1, 1], [], []>} : vector<2x128xbf16>, vector<128x512xbf16>, vector<2x512xf32> -> vector<2x512xf32>
    %14 = arith.addf %11, %13 : vector<2x512xf32>
    %15 = vector.extract_strided_slice %14 {offsets = [0, 0], sizes = [2, 128], strides = [1, 1]} : vector<2x512xf32> to vector<2x128xf32>
    %16 = arith.negf %15 : vector<2x128xf32>
    %17 = math.exp %16 : vector<2x128xf32>
    %cst_15 = arith.constant 1.000000e+00 : f32
    %18 = vector.broadcast %cst_15 : f32 to vector<2x128xf32>
    %19 = arith.addf %18, %17 : vector<2x128xf32>
    %20 = arith.divf %18, %19 : vector<2x128xf32>
    %21 = vector.extract_strided_slice %14 {offsets = [0, 128], sizes = [2, 128], strides = [1, 1]} : vector<2x512xf32> to vector<2x128xf32>
    %22 = arith.negf %21 : vector<2x128xf32>
    %23 = math.exp %22 : vector<2x128xf32>
    %cst_16 = arith.constant 1.000000e+00 : f32
    %24 = vector.broadcast %cst_16 : f32 to vector<2x128xf32>
    %25 = arith.addf %24, %23 : vector<2x128xf32>
    %26 = arith.divf %24, %25 : vector<2x128xf32>
    %27 = vector.extract_strided_slice %14 {offsets = [0, 256], sizes = [2, 128], strides = [1, 1]} : vector<2x512xf32> to vector<2x128xf32>
    %28 = math.tanh %27 : vector<2x128xf32>
    %29 = vector.extract_strided_slice %14 {offsets = [0, 384], sizes = [2, 128], strides = [1, 1]} : vector<2x512xf32> to vector<2x128xf32>
    %30 = arith.negf %29 : vector<2x128xf32>
    %31 = math.exp %30 : vector<2x128xf32>
    %cst_17 = arith.constant 1.000000e+00 : f32
    %32 = vector.broadcast %cst_17 : f32 to vector<2x128xf32>
    %33 = arith.addf %32, %31 : vector<2x128xf32>
    %34 = arith.divf %32, %33 : vector<2x128xf32>
    %35 = arith.mulf %26, %9 : vector<2x128xf32>
    %36 = arith.mulf %20, %28 : vector<2x128xf32>
    %37 = arith.addf %35, %36 : vector<2x128xf32>
    %38 = math.tanh %37 : vector<2x128xf32>
    %39 = arith.mulf %34, %38 : vector<2x128xf32>
    %c0_18 = arith.constant 0 : index
    %c0_19 = arith.constant 0 : index
    %40 = vector.load %arg12[%c0_18, %c0_19] : memref<8x128xf32, #tpu.memory_space<vmem>>, vector<2x128xf32>
    tpu.vector_store %arg12[%c0_18, %c0_19], %39 {strides = array<i32>} : memref<8x128xf32, #tpu.memory_space<vmem>>, vector<2x128xf32>,
    %41 = vector.extract_strided_slice %7 {offsets = [1, 0, 0], sizes = [1, 2, 512], strides = [1, 1, 1]} : vector<4x2x512xf32> to vector<1x2x512xf32>
    %42 = vector.shape_cast %41 : vector<1x2x512xf32> to vector<2x512xf32>
    %43 = arith.truncf %39 : vector<2x128xf32> to vector<2x128xbf16>
    %cst_20 = arith.constant dense<0.000000e+00> : vector<2x512xf32>
    %44 = tpu.matmul %43, %3, %cst_20 {dimension_numbers = #tpu.dot_dimension_numbers<[1], [0], [0], [1], [0, 0, 1, 1], [], []>} : vector<2x128xbf16>, vector<128x512xbf16>, vector<2x512xf32> -> vector<2x512xf32>
    %45 = arith.addf %42, %44 : vector<2x512xf32>
    %46 = vector.extract_strided_slice %45 {offsets = [0, 0], sizes = [2, 128], strides = [1, 1]} : vector<2x512xf32> to vector<2x128xf32>
    %47 = arith.negf %46 : vector<2x128xf32>
    %48 = math.exp %47 : vector<2x128xf32>
    %cst_21 = arith.constant 1.000000e+00 : f32
    %49 = vector.broadcast %cst_21 : f32 to vector<2x128xf32>
    %50 = arith.addf %49, %48 : vector<2x128xf32>
    %51 = arith.divf %49, %50 : vector<2x128xf32>
    %52 = vector.extract_strided_slice %45 {offsets = [0, 128], sizes = [2, 128], strides = [1, 1]} : vector<2x512xf32> to vector<2x128xf32>
    %53 = arith.negf %52 : vector<2x128xf32>
    %54 = math.exp %53 : vector<2x128xf32>
    %cst_22 = arith.constant 1.000000e+00 : f32
    %55 = vector.broadcast %cst_22 : f32 to vector<2x128xf32>
    %56 = arith.addf %55, %54 : vector<2x128xf32>
    %57 = arith.divf %55, %56 : vector<2x128xf32>
    %58 = vector.extract_strided_slice %45 {offsets = [0, 256], sizes = [2, 128], strides = [1, 1]} : vector<2x512xf32> to vector<2x128xf32>
    %59 = math.tanh %58 : vector<2x128xf32>
    %60 = vector.extract_strided_slice %45 {offsets = [0, 384], sizes = [2, 128], strides = [1, 1]} : vector<2x512xf32> to vector<2x128xf32>
    %61 = arith.negf %60 : vector<2x128xf32>
    %62 = math.exp %61 : vector<2x128xf32>
    %cst_23 = arith.constant 1.000000e+00 : f32
    %63 = vector.broadcast %cst_23 : f32 to vector<2x128xf32>
    %64 = arith.addf %63, %62 : vector<2x128xf32>
    %65 = arith.divf %63, %64 : vector<2x128xf32>
    %66 = arith.mulf %57, %37 : vector<2x128xf32>
    %67 = arith.mulf %51, %59 : vector<2x128xf32>
    %68 = arith.addf %66, %67 : vector<2x128xf32>
    %69 = math.tanh %68 : vector<2x128xf32>
    %70 = arith.mulf %65, %69 : vector<2x128xf32>
    %c2 = arith.constant 2 : index
    %c0_24 = arith.constant 0 : index
    %71 = vector.load %arg12[%c2, %c0_24] : memref<8x128xf32, #tpu.memory_space<vmem>>, vector<2x128xf32>
    tpu.vector_store %arg12[%c2, %c0_24], %70 {strides = array<i32>} : memref<8x128xf32, #tpu.memory_space<vmem>>, vector<2x128xf32>,
    %72 = vector.extract_strided_slice %7 {offsets = [2, 0, 0], sizes = [1, 2, 512], strides = [1, 1, 1]} : vector<4x2x512xf32> to vector<1x2x512xf32>
    %73 = vector.shape_cast %72 : vector<1x2x512xf32> to vector<2x512xf32>
    %74 = arith.truncf %70 : vector<2x128xf32> to vector<2x128xbf16>
    %cst_25 = arith.constant dense<0.000000e+00> : vector<2x512xf32>
    %75 = tpu.matmul %74, %3, %cst_25 {dimension_numbers = #tpu.dot_dimension_numbers<[1], [0], [0], [1], [0, 0, 1, 1], [], []>} : vector<2x128xbf16>, vector<128x512xbf16>, vector<2x512xf32> -> vector<2x512xf32>
    %76 = arith.addf %73, %75 : vector<2x512xf32>
    %77 = vector.extract_strided_slice %76 {offsets = [0, 0], sizes = [2, 128], strides = [1, 1]} : vector<2x512xf32> to vector<2x128xf32>
    %78 = arith.negf %77 : vector<2x128xf32>
    %79 = math.exp %78 : vector<2x128xf32>
    %cst_26 = arith.constant 1.000000e+00 : f32
    %80 = vector.broadcast %cst_26 : f32 to vector<2x128xf32>
    %81 = arith.addf %80, %79 : vector<2x128xf32>
    %82 = arith.divf %80, %81 : vector<2x128xf32>
    %83 = vector.extract_strided_slice %76 {offsets = [0, 128], sizes = [2, 128], strides = [1, 1]} : vector<2x512xf32> to vector<2x128xf32>
    %84 = arith.negf %83 : vector<2x128xf32>
    %85 = math.exp %84 : vector<2x128xf32>
    %cst_27 = arith.constant 1.000000e+00 : f32
    %86 = vector.broadcast %cst_27 : f32 to vector<2x128xf32>
    %87 = arith.addf %86, %85 : vector<2x128xf32>
    %88 = arith.divf %86, %87 : vector<2x128xf32>
    %89 = vector.extract_strided_slice %76 {offsets = [0, 256], sizes = [2, 128], strides = [1, 1]} : vector<2x512xf32> to vector<2x128xf32>
    %90 = math.tanh %89 : vector<2x128xf32>
    %91 = vector.extract_strided_slice %76 {offsets = [0, 384], sizes = [2, 128], strides = [1, 1]} : vector<2x512xf32> to vector<2x128xf32>
    %92 = arith.negf %91 : vector<2x128xf32>
    %93 = math.exp %92 : vector<2x128xf32>
    %cst_28 = arith.constant 1.000000e+00 : f32
    %94 = vector.broadcast %cst_28 : f32 to vector<2x128xf32>
    %95 = arith.addf %94, %93 : vector<2x128xf32>
    %96 = arith.divf %94, %95 : vector<2x128xf32>
    %97 = arith.mulf %88, %68 : vector<2x128xf32>
    %98 = arith.mulf %82, %90 : vector<2x128xf32>
    %99 = arith.addf %97, %98 : vector<2x128xf32>
    %100 = math.tanh %99 : vector<2x128xf32>
    %101 = arith.mulf %96, %100 : vector<2x128xf32>
    %c4 = arith.constant 4 : index
    %c0_29 = arith.constant 0 : index
    %102 = vector.load %arg12[%c4, %c0_29] : memref<8x128xf32, #tpu.memory_space<vmem>>, vector<2x128xf32>
    tpu.vector_store %arg12[%c4, %c0_29], %101 {strides = array<i32>} : memref<8x128xf32, #tpu.memory_space<vmem>>, vector<2x128xf32>,
    %103 = vector.extract_strided_slice %7 {offsets = [3, 0, 0], sizes = [1, 2, 512], strides = [1, 1, 1]} : vector<4x2x512xf32> to vector<1x2x512xf32>
    %104 = vector.shape_cast %103 : vector<1x2x512xf32> to vector<2x512xf32>
    %105 = arith.truncf %101 : vector<2x128xf32> to vector<2x128xbf16>
    %cst_30 = arith.constant dense<0.000000e+00> : vector<2x512xf32>
    %106 = tpu.matmul %105, %3, %cst_30 {dimension_numbers = #tpu.dot_dimension_numbers<[1], [0], [0], [1], [0, 0, 1, 1], [], []>} : vector<2x128xbf16>, vector<128x512xbf16>, vector<2x512xf32> -> vector<2x512xf32>
    %107 = arith.addf %104, %106 : vector<2x512xf32>
    %108 = vector.extract_strided_slice %107 {offsets = [0, 0], sizes = [2, 128], strides = [1, 1]} : vector<2x512xf32> to vector<2x128xf32>
    %109 = arith.negf %108 : vector<2x128xf32>
    %110 = math.exp %109 : vector<2x128xf32>
    %cst_31 = arith.constant 1.000000e+00 : f32
    %111 = vector.broadcast %cst_31 : f32 to vector<2x128xf32>
    %112 = arith.addf %111, %110 : vector<2x128xf32>
    %113 = arith.divf %111, %112 : vector<2x128xf32>
    %114 = vector.extract_strided_slice %107 {offsets = [0, 128], sizes = [2, 128], strides = [1, 1]} : vector<2x512xf32> to vector<2x128xf32>
    %115 = arith.negf %114 : vector<2x128xf32>
    %116 = math.exp %115 : vector<2x128xf32>
    %cst_32 = arith.constant 1.000000e+00 : f32
    %117 = vector.broadcast %cst_32 : f32 to vector<2x128xf32>
    %118 = arith.addf %117, %116 : vector<2x128xf32>
    %119 = arith.divf %117, %118 : vector<2x128xf32>
    %120 = vector.extract_strided_slice %107 {offsets = [0, 256], sizes = [2, 128], strides = [1, 1]} : vector<2x512xf32> to vector<2x128xf32>
    %121 = math.tanh %120 : vector<2x128xf32>
    %122 = vector.extract_strided_slice %107 {offsets = [0, 384], sizes = [2, 128], strides = [1, 1]} : vector<2x512xf32> to vector<2x128xf32>
    %123 = arith.negf %122 : vector<2x128xf32>
    %124 = math.exp %123 : vector<2x128xf32>
    %cst_33 = arith.constant 1.000000e+00 : f32
    %125 = vector.broadcast %cst_33 : f32 to vector<2x128xf32>
    %126 = arith.addf %125, %124 : vector<2x128xf32>
    %127 = arith.divf %125, %126 : vector<2x128xf32>
    %128 = arith.mulf %119, %99 : vector<2x128xf32>
    %129 = arith.mulf %113, %121 : vector<2x128xf32>
    %130 = arith.addf %128, %129 : vector<2x128xf32>
    %131 = math.tanh %130 : vector<2x128xf32>
    %132 = arith.mulf %127, %131 : vector<2x128xf32>
    %c6 = arith.constant 6 : index
    %c0_34 = arith.constant 0 : index
    %133 = vector.load %arg12[%c6, %c0_34] : memref<8x128xf32, #tpu.memory_space<vmem>>, vector<2x128xf32>
    tpu.vector_store %arg12[%c6, %c0_34], %132 {strides = array<i32>} : memref<8x128xf32, #tpu.memory_space<vmem>>, vector<2x128xf32>,
    %c0_35 = arith.constant 0 : index
    %c0_36 = arith.constant 0 : index
    %134 = vector.load %arg8[%c0_35, %c0_36] : memref<2x128xf32, #tpu.memory_space<vmem>>, vector<2x128xf32>
    tpu.vector_store %arg8[%c0_35, %c0_36], %132 {strides = array<i32>} : memref<2x128xf32, #tpu.memory_space<vmem>>, vector<2x128xf32>,
    %c0_37 = arith.constant 0 : index
    %c0_38 = arith.constant 0 : index
    %135 = vector.load %arg9[%c0_37, %c0_38] : memref<2x128xf32, #tpu.memory_space<vmem>>, vector<2x128xf32>
    tpu.vector_store %arg9[%c0_37, %c0_38], %130 {strides = array<i32>} : memref<2x128xf32, #tpu.memory_space<vmem>>, vector<2x128xf32>,
    %c0_39 = arith.constant 0 : index
    %c0_40 = arith.constant 0 : index
    %136 = vector.load %arg12[%c0_39, %c0_40] : memref<8x128xf32, #tpu.memory_space<vmem>>, vector<8x128xf32>
    %137 = arith.truncf %136 : vector<8x128xf32> to vector<8x128xbf16>
    %cst_41 = arith.constant dense<0.000000e+00> : vector<8x512xf32>
    %138 = tpu.matmul %137, %4, %cst_41 {dimension_numbers = #tpu.dot_dimension_numbers<[1], [0], [0], [1], [0, 0, 1, 1], [], []>} : vector<8x128xbf16>, vector<128x512xbf16>, vector<8x512xf32> -> vector<8x512xf32>
    %139 = vector.broadcast %6 : vector<1x512xf32> to vector<8x512xf32>
    %140 = arith.addf %138, %139 : vector<8x512xf32>
    %c0_42 = arith.constant 0 : index
    %c0_43 = arith.constant 0 : index
    %141 = vector.load %arg10[%c0_42, %c0_43] : memref<2x128xf32, #tpu.memory_space<vmem>>, vector<2x128xf32>
    %c0_44 = arith.constant 0 : index
    %c0_45 = arith.constant 0 : index
    %142 = vector.load %arg11[%c0_44, %c0_45] : memref<2x128xf32, #tpu.memory_space<vmem>>, vector<2x128xf32>
    %143 = vector.extract_strided_slice %140 {offsets = [0, 0], sizes = [2, 512], strides = [1, 1]} : vector<8x512xf32> to vector<2x512xf32>
    %144 = arith.truncf %141 : vector<2x128xf32> to vector<2x128xbf16>
    %cst_46 = arith.constant dense<0.000000e+00> : vector<2x512xf32>
    %145 = tpu.matmul %144, %5, %cst_46 {dimension_numbers = #tpu.dot_dimension_numbers<[1], [0], [0], [1], [0, 0, 1, 1], [], []>} : vector<2x128xbf16>, vector<128x512xbf16>, vector<2x512xf32> -> vector<2x512xf32>
    %146 = arith.addf %143, %145 : vector<2x512xf32>
    %147 = vector.extract_strided_slice %146 {offsets = [0, 0], sizes = [2, 128], strides = [1, 1]} : vector<2x512xf32> to vector<2x128xf32>
    %148 = arith.negf %147 : vector<2x128xf32>
    %149 = math.exp %148 : vector<2x128xf32>
    %cst_47 = arith.constant 1.000000e+00 : f32
    %150 = vector.broadcast %cst_47 : f32 to vector<2x128xf32>
    %151 = arith.addf %150, %149 : vector<2x128xf32>
    %152 = arith.divf %150, %151 : vector<2x128xf32>
    %153 = vector.extract_strided_slice %146 {offsets = [0, 128], sizes = [2, 128], strides = [1, 1]} : vector<2x512xf32> to vector<2x128xf32>
    %154 = arith.negf %153 : vector<2x128xf32>
    %155 = math.exp %154 : vector<2x128xf32>
    %cst_48 = arith.constant 1.000000e+00 : f32
    %156 = vector.broadcast %cst_48 : f32 to vector<2x128xf32>
    %157 = arith.addf %156, %155 : vector<2x128xf32>
    %158 = arith.divf %156, %157 : vector<2x128xf32>
    %159 = vector.extract_strided_slice %146 {offsets = [0, 256], sizes = [2, 128], strides = [1, 1]} : vector<2x512xf32> to vector<2x128xf32>
    %160 = math.tanh %159 : vector<2x128xf32>
    %161 = vector.extract_strided_slice %146 {offsets = [0, 384], sizes = [2, 128], strides = [1, 1]} : vector<2x512xf32> to vector<2x128xf32>
    %162 = arith.negf %161 : vector<2x128xf32>
    %163 = math.exp %162 : vector<2x128xf32>
    %cst_49 = arith.constant 1.000000e+00 : f32
    %164 = vector.broadcast %cst_49 : f32 to vector<2x128xf32>
    %165 = arith.addf %164, %163 : vector<2x128xf32>
    %166 = arith.divf %164, %165 : vector<2x128xf32>
    %167 = arith.mulf %158, %142 : vector<2x128xf32>
    %168 = arith.mulf %152, %160 : vector<2x128xf32>
    %169 = arith.addf %167, %168 : vector<2x128xf32>
    %170 = math.tanh %169 : vector<2x128xf32>
    %171 = arith.mulf %166, %170 : vector<2x128xf32>
    %c0_50 = arith.constant 0 : index
    %c0_51 = arith.constant 0 : index
    %c0_52 = arith.constant 0 : index
    %172 = vector.load %arg7[%c0_50, %c0_51, %c0_52] : memref<4x2x128xf32, #tpu.memory_space<vmem>>, vector<1x2x128xf32>
    %173 = vector.shape_cast %172 : vector<1x2x128xf32> to vector<2x128xf32>
    %174 = vector.shape_cast %171 : vector<2x128xf32> to vector<1x2x128xf32>
    tpu.vector_store %arg7[%c0_50, %c0_51, %c0_52], %174 {strides = array<i32>} : memref<4x2x128xf32, #tpu.memory_space<vmem>>, vector<1x2x128xf32>,
    %175 = vector.extract_strided_slice %140 {offsets = [2, 0], sizes = [2, 512], strides = [1, 1]} : vector<8x512xf32> to vector<2x512xf32>
    %176 = arith.truncf %171 : vector<2x128xf32> to vector<2x128xbf16>
    %cst_53 = arith.constant dense<0.000000e+00> : vector<2x512xf32>
    %177 = tpu.matmul %176, %5, %cst_53 {dimension_numbers = #tpu.dot_dimension_numbers<[1], [0], [0], [1], [0, 0, 1, 1], [], []>} : vector<2x128xbf16>, vector<128x512xbf16>, vector<2x512xf32> -> vector<2x512xf32>
    %178 = arith.addf %175, %177 : vector<2x512xf32>
    %179 = vector.extract_strided_slice %178 {offsets = [0, 0], sizes = [2, 128], strides = [1, 1]} : vector<2x512xf32> to vector<2x128xf32>
    %180 = arith.negf %179 : vector<2x128xf32>
    %181 = math.exp %180 : vector<2x128xf32>
    %cst_54 = arith.constant 1.000000e+00 : f32
    %182 = vector.broadcast %cst_54 : f32 to vector<2x128xf32>
    %183 = arith.addf %182, %181 : vector<2x128xf32>
    %184 = arith.divf %182, %183 : vector<2x128xf32>
    %185 = vector.extract_strided_slice %178 {offsets = [0, 128], sizes = [2, 128], strides = [1, 1]} : vector<2x512xf32> to vector<2x128xf32>
    %186 = arith.negf %185 : vector<2x128xf32>
    %187 = math.exp %186 : vector<2x128xf32>
    %cst_55 = arith.constant 1.000000e+00 : f32
    %188 = vector.broadcast %cst_55 : f32 to vector<2x128xf32>
    %189 = arith.addf %188, %187 : vector<2x128xf32>
    %190 = arith.divf %188, %189 : vector<2x128xf32>
    %191 = vector.extract_strided_slice %178 {offsets = [0, 256], sizes = [2, 128], strides = [1, 1]} : vector<2x512xf32> to vector<2x128xf32>
    %192 = math.tanh %191 : vector<2x128xf32>
    %193 = vector.extract_strided_slice %178 {offsets = [0, 384], sizes = [2, 128], strides = [1, 1]} : vector<2x512xf32> to vector<2x128xf32>
    %194 = arith.negf %193 : vector<2x128xf32>
    %195 = math.exp %194 : vector<2x128xf32>
    %cst_56 = arith.constant 1.000000e+00 : f32
    %196 = vector.broadcast %cst_56 : f32 to vector<2x128xf32>
    %197 = arith.addf %196, %195 : vector<2x128xf32>
    %198 = arith.divf %196, %197 : vector<2x128xf32>
    %199 = arith.mulf %190, %169 : vector<2x128xf32>
    %200 = arith.mulf %184, %192 : vector<2x128xf32>
    %201 = arith.addf %199, %200 : vector<2x128xf32>
    %202 = math.tanh %201 : vector<2x128xf32>
    %203 = arith.mulf %198, %202 : vector<2x128xf32>
    %c1 = arith.constant 1 : index
    %c0_57 = arith.constant 0 : index
    %c0_58 = arith.constant 0 : index
    %204 = vector.load %arg7[%c1, %c0_57, %c0_58] : memref<4x2x128xf32, #tpu.memory_space<vmem>>, vector<1x2x128xf32>
    %205 = vector.shape_cast %204 : vector<1x2x128xf32> to vector<2x128xf32>
    %206 = vector.shape_cast %203 : vector<2x128xf32> to vector<1x2x128xf32>
    tpu.vector_store %arg7[%c1, %c0_57, %c0_58], %206 {strides = array<i32>} : memref<4x2x128xf32, #tpu.memory_space<vmem>>, vector<1x2x128xf32>,
    %207 = vector.extract_strided_slice %140 {offsets = [4, 0], sizes = [2, 512], strides = [1, 1]} : vector<8x512xf32> to vector<2x512xf32>
    %208 = arith.truncf %203 : vector<2x128xf32> to vector<2x128xbf16>
    %cst_59 = arith.constant dense<0.000000e+00> : vector<2x512xf32>
    %209 = tpu.matmul %208, %5, %cst_59 {dimension_numbers = #tpu.dot_dimension_numbers<[1], [0], [0], [1], [0, 0, 1, 1], [], []>} : vector<2x128xbf16>, vector<128x512xbf16>, vector<2x512xf32> -> vector<2x512xf32>
    %210 = arith.addf %207, %209 : vector<2x512xf32>
    %211 = vector.extract_strided_slice %210 {offsets = [0, 0], sizes = [2, 128], strides = [1, 1]} : vector<2x512xf32> to vector<2x128xf32>
    %212 = arith.negf %211 : vector<2x128xf32>
    %213 = math.exp %212 : vector<2x128xf32>
    %cst_60 = arith.constant 1.000000e+00 : f32
    %214 = vector.broadcast %cst_60 : f32 to vector<2x128xf32>
    %215 = arith.addf %214, %213 : vector<2x128xf32>
    %216 = arith.divf %214, %215 : vector<2x128xf32>
    %217 = vector.extract_strided_slice %210 {offsets = [0, 128], sizes = [2, 128], strides = [1, 1]} : vector<2x512xf32> to vector<2x128xf32>
    %218 = arith.negf %217 : vector<2x128xf32>
    %219 = math.exp %218 : vector<2x128xf32>
    %cst_61 = arith.constant 1.000000e+00 : f32
    %220 = vector.broadcast %cst_61 : f32 to vector<2x128xf32>
    %221 = arith.addf %220, %219 : vector<2x128xf32>
    %222 = arith.divf %220, %221 : vector<2x128xf32>
    %223 = vector.extract_strided_slice %210 {offsets = [0, 256], sizes = [2, 128], strides = [1, 1]} : vector<2x512xf32> to vector<2x128xf32>
    %224 = math.tanh %223 : vector<2x128xf32>
    %225 = vector.extract_strided_slice %210 {offsets = [0, 384], sizes = [2, 128], strides = [1, 1]} : vector<2x512xf32> to vector<2x128xf32>
    %226 = arith.negf %225 : vector<2x128xf32>
    %227 = math.exp %226 : vector<2x128xf32>
    %cst_62 = arith.constant 1.000000e+00 : f32
    %228 = vector.broadcast %cst_62 : f32 to vector<2x128xf32>
    %229 = arith.addf %228, %227 : vector<2x128xf32>
    %230 = arith.divf %228, %229 : vector<2x128xf32>
    %231 = arith.mulf %222, %201 : vector<2x128xf32>
    %232 = arith.mulf %216, %224 : vector<2x128xf32>
    %233 = arith.addf %231, %232 : vector<2x128xf32>
    %234 = math.tanh %233 : vector<2x128xf32>
    %235 = arith.mulf %230, %234 : vector<2x128xf32>
    %c2_63 = arith.constant 2 : index
    %c0_64 = arith.constant 0 : index
    %c0_65 = arith.constant 0 : index
    %236 = vector.load %arg7[%c2_63, %c0_64, %c0_65] : memref<4x2x128xf32, #tpu.memory_space<vmem>>, vector<1x2x128xf32>
    %237 = vector.shape_cast %236 : vector<1x2x128xf32> to vector<2x128xf32>
    %238 = vector.shape_cast %235 : vector<2x128xf32> to vector<1x2x128xf32>
    tpu.vector_store %arg7[%c2_63, %c0_64, %c0_65], %238 {strides = array<i32>} : memref<4x2x128xf32, #tpu.memory_space<vmem>>, vector<1x2x128xf32>,
    %239 = vector.extract_strided_slice %140 {offsets = [6, 0], sizes = [2, 512], strides = [1, 1]} : vector<8x512xf32> to vector<2x512xf32>
    %240 = arith.truncf %235 : vector<2x128xf32> to vector<2x128xbf16>
    %cst_66 = arith.constant dense<0.000000e+00> : vector<2x512xf32>
    %241 = tpu.matmul %240, %5, %cst_66 {dimension_numbers = #tpu.dot_dimension_numbers<[1], [0], [0], [1], [0, 0, 1, 1], [], []>} : vector<2x128xbf16>, vector<128x512xbf16>, vector<2x512xf32> -> vector<2x512xf32>
    %242 = arith.addf %239, %241 : vector<2x512xf32>
    %243 = vector.extract_strided_slice %242 {offsets = [0, 0], sizes = [2, 128], strides = [1, 1]} : vector<2x512xf32> to vector<2x128xf32>
    %244 = arith.negf %243 : vector<2x128xf32>
    %245 = math.exp %244 : vector<2x128xf32>
    %cst_67 = arith.constant 1.000000e+00 : f32
    %246 = vector.broadcast %cst_67 : f32 to vector<2x128xf32>
    %247 = arith.addf %246, %245 : vector<2x128xf32>
    %248 = arith.divf %246, %247 : vector<2x128xf32>
    %249 = vector.extract_strided_slice %242 {offsets = [0, 128], sizes = [2, 128], strides = [1, 1]} : vector<2x512xf32> to vector<2x128xf32>
    %250 = arith.negf %249 : vector<2x128xf32>
    %251 = math.exp %250 : vector<2x128xf32>
    %cst_68 = arith.constant 1.000000e+00 : f32
    %252 = vector.broadcast %cst_68 : f32 to vector<2x128xf32>
    %253 = arith.addf %252, %251 : vector<2x128xf32>
    %254 = arith.divf %252, %253 : vector<2x128xf32>
    %255 = vector.extract_strided_slice %242 {offsets = [0, 256], sizes = [2, 128], strides = [1, 1]} : vector<2x512xf32> to vector<2x128xf32>
    %256 = math.tanh %255 : vector<2x128xf32>
    %257 = vector.extract_strided_slice %242 {offsets = [0, 384], sizes = [2, 128], strides = [1, 1]} : vector<2x512xf32> to vector<2x128xf32>
    %258 = arith.negf %257 : vector<2x128xf32>
    %259 = math.exp %258 : vector<2x128xf32>
    %cst_69 = arith.constant 1.000000e+00 : f32
    %260 = vector.broadcast %cst_69 : f32 to vector<2x128xf32>
    %261 = arith.addf %260, %259 : vector<2x128xf32>
    %262 = arith.divf %260, %261 : vector<2x128xf32>
    %263 = arith.mulf %254, %233 : vector<2x128xf32>
    %264 = arith.mulf %248, %256 : vector<2x128xf32>
    %265 = arith.addf %263, %264 : vector<2x128xf32>
    %266 = math.tanh %265 : vector<2x128xf32>
    %267 = arith.mulf %262, %266 : vector<2x128xf32>
    %c3 = arith.constant 3 : index
    %c0_70 = arith.constant 0 : index
    %c0_71 = arith.constant 0 : index
    %268 = vector.load %arg7[%c3, %c0_70, %c0_71] : memref<4x2x128xf32, #tpu.memory_space<vmem>>, vector<1x2x128xf32>
    %269 = vector.shape_cast %268 : vector<1x2x128xf32> to vector<2x128xf32>
    %270 = vector.shape_cast %267 : vector<2x128xf32> to vector<1x2x128xf32>
    tpu.vector_store %arg7[%c3, %c0_70, %c0_71], %270 {strides = array<i32>} : memref<4x2x128xf32, #tpu.memory_space<vmem>>, vector<1x2x128xf32>,
    %c0_72 = arith.constant 0 : index
    %c0_73 = arith.constant 0 : index
    %271 = vector.load %arg10[%c0_72, %c0_73] : memref<2x128xf32, #tpu.memory_space<vmem>>, vector<2x128xf32>
    tpu.vector_store %arg10[%c0_72, %c0_73], %267 {strides = array<i32>} : memref<2x128xf32, #tpu.memory_space<vmem>>, vector<2x128xf32>,
    %c0_74 = arith.constant 0 : index
    %c0_75 = arith.constant 0 : index
    %272 = vector.load %arg11[%c0_74, %c0_75] : memref<2x128xf32, #tpu.memory_space<vmem>>, vector<2x128xf32>
    tpu.vector_store %arg11[%c0_74, %c0_75], %265 {strides = array<i32>} : memref<2x128xf32, #tpu.memory_space<vmem>>, vector<2x128xf32>,
    return
  }
  func.func @transform_0(%arg0: i32, %arg1: i32) -> (i32, i32, i32) {
    %c0_i32 = arith.constant 0 : i32
    %c0_i32_0 = arith.constant 0 : i32
    return %arg1, %arg0, %c0_i32 : i32, i32, i32
  }
  func.func @transform_1(%arg0: i32, %arg1: i32) -> (i32, i32) {
    %c0_i32 = arith.constant 0 : i32
    %c0_i32_0 = arith.constant 0 : i32
    %c0_i32_1 = arith.constant 0 : i32
    return %c0_i32, %c0_i32_0 : i32, i32
  }
  func.func @transform_2(%arg0: i32, %arg1: i32) -> (i32, i32) {
    %c0_i32 = arith.constant 0 : i32
    %c0_i32_0 = arith.constant 0 : i32
    %c0_i32_1 = arith.constant 0 : i32
    return %c0_i32, %c0_i32_0 : i32, i32
  }
  func.func @transform_3(%arg0: i32, %arg1: i32) -> (i32, i32) {
    %c0_i32 = arith.constant 0 : i32
    %c0_i32_0 = arith.constant 0 : i32
    %c0_i32_1 = arith.constant 0 : i32
    return %c0_i32, %c0_i32_0 : i32, i32
  }
  func.func @transform_4(%arg0: i32, %arg1: i32) -> (i32, i32) {
    %c0_i32 = arith.constant 0 : i32
    %c0_i32_0 = arith.constant 0 : i32
    %c0_i32_1 = arith.constant 0 : i32
    return %c0_i32, %c0_i32_0 : i32, i32
  }
  func.func @transform_5(%arg0: i32, %arg1: i32) -> (i32, i32, i32) {
    %c0_i32 = arith.constant 0 : i32
    %c0_i32_0 = arith.constant 0 : i32
    return %arg1, %arg0, %c0_i32 : i32, i32, i32
  }
}

</mosaic_0001>

<bundles_post_ra>
// kernel: lstm_encoder_forward.1
= control target key start
LH: loop header
LB: loop body
LE: loop exit
PB: predicated region body
PF: predicated region fallthrough
CT: control target
= control target key end

     0   :  { %s2823_s18 = smov 0   ;;  %s2825_s19 = smov 0   ;;  %s3976_s0 = inlined_call_operand.vmem [shape: f32[8,2,512], index: 0, kind: input, shape index: {}]   ;;  %s3977_s1 = inlined_call_operand.vmem [shape: bf16[128,512], index: 1, kind: input, shape index: {}]   ;;  %s3978_s2 = inlined_call_operand.vmem [shape: bf16[128,512], index: 2, kind: input, shape index: {}]   ;;  %s3979_s3 = inlined_call_operand.vmem [shape: bf16[128,512], index: 3, kind: input, shape index: {}]   ;;  %s3980_s4 = inlined_call_operand.vmem [shape: f32[1,512], index: 4, kind: input, shape index: {}]   ;;  %s3981_s5 = inlined_call_operand.vmem [shape: f32[8,2,128], index: 5, kind: output, shape index: {}]  }
   0x1   :  { %s2827_s20 = smov 0  }
   0x2 LB: > { %s24_s21 = sadd.s32 1, %s2786_s19  ;;  %p2098_p0 = scmp.ge.s32.totalorder %s2790_s20, 1  ;;  %s2790_s20 = sphi %s2827_s20, %s15_s20   ;;  %s2786_s19 = sphi %s2825_s19, %s3991_s19   ;;  %s2782_s18 = sphi %s2823_s18, %s3990_s18  }
   0x3   : > { %p25_p1 = scmp.ge.s32.totalorder %s24_s21, 2  ;;  %p209_p2 = scmp.lt.s32.totalorder %s2790_s20, 3 }
   0x5   : > { %s3993_s21 = smov (%p25_p1, %s24_s21), 0  ;;  %p210_p3 = pnand %p2098_p0, %p209_p2 }
   0x6   : > { %s2099_s22 = sshll.u32 (!%p210_p3), %s2782_s18, 2  ;;  %p2104_p5 = scmp.ne.s32.totalorder (!%p210_p3), %s2782_s18, 0 }
   0x7   : > { %213 = sbr.rel (%p210_p3) target bundleno = 1516 (0x5ec), region = 40  ;;  %p246_p4 = scmp.lt.s32.totalorder (!%p210_p3), %s2099_s22, 7 }
   0xc   : > { %s3995_s22 = smov (!%p246_p4, %s2099_s22), 7  ;;  %268 = sbr.rel (%p2104_p5) target bundleno = 22 (0x16), region = 44 }
   0xd   : > { %s2518_s23 = sshll.u32 %s3995_s22, 3  ;;  %s2103_s24 = sshll.u32 %s3995_s22, 1 }
   0xe   : > { %s2844_s27 = scalar_lea.vmem %s3976_s0, %s2518_s23  ;;  %s2849_s30 = scalar_lea.vmem %s3981_s5, %s2103_s24 }
  0x11   : > { %v2792_v0 = vmov 0.0  }
  0x12   : > { %269 = vst [vmem:[#allocation2] sm:$0x3] %v2792_v0 }
  0x13   : > { %270 = vst [vmem:[#allocation3] sm:$0x3] %v2792_v0 }
  0x14   : > { %271 = vst [vmem:[#allocation4] sm:$0x3] %v2792_v0 }
  0x15   : > { %272 = vst [vmem:[#allocation5] sm:$0x3] %v2792_v0 }
  0x16 PF: > { %v2219_v1 = vld [vmem:[%s3977_s1 + $0xe0] sm:$0xf]  ;;  %v2549_v2 = vld [vmem:[%s3977_s1 + $0xec] sm:$0xf0]  ;;  %v2547_v3 = vld [vmem:[%s3977_s1 + $0xe4] sm:$0xf] }
  0x17   : > { %v2860_v4 = vor.u32 %v2549_v2, %v2219_v1  ;;  %v2221_v5 = vld [vmem:[%s3977_s1 + $0xf0] sm:$0xf0]  ;;  %v2227_v6 = vld [vmem:[%s3977_s1 + $0xe8] sm:$0xf]  ;;  %v2550_v7 = vld [vmem:[%s3977_s1 + $0xf4] sm:$0xf0] }
  0x18   : > { %v2871_v8 = vor.u32 %v2547_v3, %v2221_v5  ;;  %v2873_v9 = vor.u32 %v2550_v7, %v2227_v6  ;;  %v2548_v10 = vld [vmem:[%s3977_s1 + $0xec] sm:$0xf]  ;;  %v2229_v11 = vld [vmem:[%s3977_s1 + $0xf8] sm:$0xf0]  ;;  %v2203_v12 = vld [vmem:[%s3977_s1 + $0xc0] sm:$0xf] }
  0x19   : > { %537 = vmatpush.bf16.msra.mxu0 %v2860_v4  ;;  %v2885_v13 = vor.u32 %v2548_v10, %v2229_v11  ;;  %v2545_v14 = vld [vmem:[%s3977_s1 + $0xcc] sm:$0xf0]  ;;  %v2543_v15 = vld [vmem:[%s3977_s1 + $0xc4] sm:$0xf]  ;;  %v2205_v16 = vld [vmem:[%s3977_s1 + $0xd0] sm:$0xf0] }
  0x1a   : > { %550 = vmatpush.bf16.msra.mxu1 %v2871_v8  ;;  %563 = vmatpush.bf16.msra.mxu2 %v2873_v9  ;;  %v2898_v17 = vor.u32 %v2545_v14, %v2203_v12  ;;  %v2900_v18 = vor.u32 %v2543_v15, %v2205_v16  ;;  %v2211_v19 = vld [vmem:[%s3977_s1 + $0xc8] sm:$0xf]  ;;  %v2546_v20 = vld [vmem:[%s3977_s1 + $0xd4] sm:$0xf0]  ;;  %v2544_v21 = vld [vmem:[%s3977_s1 + $0xcc] sm:$0xf] }
  0x1b   : > { %576 = vmatpush.bf16.msra.mxu3 %v2885_v13  ;;  %v2912_v22 = vor.u32 %v2546_v20, %v2211_v19  ;;  %v2213_v23 = vld [vmem:[%s3977_s1 + $0xd8] sm:$0xf0]  ;;  %v2187_v24 = vld [vmem:[%s3977_s1 + $0xa0] sm:$0xf]  ;;  %v2541_v25 = vld [vmem:[%s3977_s1 + $0xac] sm:$0xf0] }
  0x1c   : > { %v2923_v26 = vor.u32 %v2544_v21, %v2213_v23  ;;  %v2539_v27 = vld [vmem:[%s3977_s1 + $0xa4] sm:$0xf]  ;;  %v2189_v28 = vld [vmem:[%s3977_s1 + $0xb0] sm:$0xf0]  ;;  %v2195_v29 = vld [vmem:[%s3977_s1 + $0xa8] sm:$0xf]  ;;  %v2935_v30 = vor.u32 %v2541_v25, %v2187_v24 }
  0x1d   : > { %538 = vmatpush.bf16.msra.mxu0 %v2898_v17  ;;  %v2542_v31 = vld [vmem:[%s3977_s1 + $0xb4] sm:$0xf0]  ;;  %v2540_v32 = vld [vmem:[%s3977_s1 + $0xac] sm:$0xf]  ;;  %v2197_v33 = vld [vmem:[%s3977_s1 + $0xb8] sm:$0xf0]  ;;  %v2948_v34 = vor.u32 %v2539_v27, %v2189_v28 }
  0x1e   : > { %551 = vmatpush.bf16.msra.mxu1 %v2900_v18  ;;  %564 = vmatpush.bf16.msra.mxu2 %v2912_v22  ;;  %v2950_v35 = vor.u32 %v2542_v31, %v2195_v29  ;;  %v2171_v36 = vld [vmem:[%s3977_s1 + $0x80] sm:$0xf]  ;;  %v2537_v37 = vld [vmem:[%s3977_s1 + $0x8c] sm:$0xf0]  ;;  %v2535_v38 = vld [vmem:[%s3977_s1 + $0x84] sm:$0xf]  ;;  %v2962_v39 = vor.u32 %v2540_v32, %v2197_v33 }
  0x1f   : > { %577 = vmatpush.bf16.msra.mxu3 %v2923_v26  ;;  %v2173_v40 = vld [vmem:[%s3977_s1 + $0x90] sm:$0xf0]  ;;  %v2179_v41 = vld [vmem:[%s3977_s1 + $0x88] sm:$0xf]  ;;  %v2538_v42 = vld [vmem:[%s3977_s1 + $0x94] sm:$0xf0]  ;;  %v2980_v45 = vor.u32 %v2537_v37, %v2171_v36 }
  0x20   : > { %v2536_v43 = vld [vmem:[%s3977_s1 + $0x8c] sm:$0xf]  ;;  %v2181_v44 = vld [vmem:[%s3977_s1 + $0x98] sm:$0xf0]  ;;  %v2984_v46 = vor.u32 %v2535_v38, %v2173_v40  ;;  %v2986_v47 = vor.u32 %v2538_v42, %v2179_v41  ;;  %v2155_v48 = vld [vmem:[%s3977_s1 + $0x60] sm:$0xf] }
  0x21   : > { %539 = vmatpush.bf16.msra.mxu0 %v2935_v30  ;;  %v2533_v49 = vld [vmem:[%s3977_s1 + $0x6c] sm:$0xf0]  ;;  %v2531_v50 = vld [vmem:[%s3977_s1 + $0x64] sm:$0xf]  ;;  %v2998_v51 = vor.u32 %v2536_v43, %v2181_v44  ;;  %v2157_v52 = vld [vmem:[%s3977_s1 + $0x70] sm:$0xf0] }
  0x22   : > { %552 = vmatpush.bf16.msra.mxu1 %v2948_v34  ;;  %565 = vmatpush.bf16.msra.mxu2 %v2950_v35  ;;  %v2163_v53 = vld [vmem:[%s3977_s1 + $0x68] sm:$0xf]  ;;  %v2534_v54 = vld [vmem:[%s3977_s1 + $0x74] sm:$0xf0]  ;;  %v2532_v55 = vld [vmem:[%s3977_s1 + $0x6c] sm:$0xf]  ;;  %v3016_v57 = vor.u32 %v2533_v49, %v2155_v48  ;;  %v3020_v58 = vor.u32 %v2531_v50, %v2157_v52 }
  0x23   : > { %578 = vmatpush.bf16.msra.mxu3 %v2962_v39  ;;  %v2165_v56 = vld [vmem:[%s3977_s1 + $0x78] sm:$0xf0]  ;;  %v3022_v59 = vor.u32 %v2534_v54, %v2163_v53  ;;  %v2139_v60 = vld [vmem:[%s3977_s1 + $0x40] sm:$0xf]  ;;  %v2529_v61 = vld [vmem:[%s3977_s1 + $0x4c] sm:$0xf0] }
  0x24   : > { %v2527_v62 = vld [vmem:[%s3977_s1 + $0x44] sm:$0xf]  ;;  %v3034_v63 = vor.u32 %v2532_v55, %v2165_v56  ;;  %v2141_v0 = vld [vmem:[%s3977_s1 + $0x50] sm:$0xf0]  ;;  %v2147_v1 = vld [vmem:[%s3977_s1 + $0x48] sm:$0xf]  ;;  %v3052_v6 = vor.u32 %v2529_v61, %v2139_v60 }
  0x25   : > { %540 = vmatpush.bf16.msra.mxu0 %v2980_v45  ;;  %v2530_v2 = vld [vmem:[%s3977_s1 + $0x54] sm:$0xf0]  ;;  %v2528_v3 = vld [vmem:[%s3977_s1 + $0x4c] sm:$0xf]  ;;  %v2149_v5 = vld [vmem:[%s3977_s1 + $0x58] sm:$0xf0]  ;;  %v3056_v7 = vor.u32 %v2527_v62, %v2141_v0 }
  0x26   : > { %553 = vmatpush.bf16.msra.mxu1 %v2984_v46  ;;  %566 = vmatpush.bf16.msra.mxu2 %v2986_v47  ;;  %v3058_v10 = vor.u32 %v2530_v2, %v2147_v1  ;;  %v2123_v11 = vld [vmem:[%s3977_s1 + $0x20] sm:$0xf]  ;;  %v2525_v12 = vld [vmem:[%s3977_s1 + $0x2c] sm:$0xf0]  ;;  %v2523_v14 = vld [vmem:[%s3977_s1 + $0x24] sm:$0xf]  ;;  %v3070_v15 = vor.u32 %v2528_v3, %v2149_v5 }
  0x27   : > { %579 = vmatpush.bf16.msra.mxu3 %v2998_v51  ;;  %v2125_v16 = vld [vmem:[%s3977_s1 + $0x30] sm:$0xf0]  ;;  %v2131_v19 = vld [vmem:[%s3977_s1 + $0x28] sm:$0xf]  ;;  %v2526_v20 = vld [vmem:[%s3977_s1 + $0x34] sm:$0xf0]  ;;  %v3088_v24 = vor.u32 %v2525_v12, %v2123_v11 }
  0x28   : > { %v2524_v21 = vld [vmem:[%s3977_s1 + $0x2c] sm:$0xf]  ;;  %v2133_v23 = vld [vmem:[%s3977_s1 + $0x38] sm:$0xf0]  ;;  %v3092_v25 = vor.u32 %v2523_v14, %v2125_v16  ;;  %v3094_v27 = vor.u32 %v2526_v20, %v2131_v19  ;;  %v2107_v28 = vld [vmem:[%s3977_s1] sm:$0xf] }
  0x29   : > { %541 = vmatpush.bf16.msra.mxu0 %v3016_v57  ;;  %v2521_v29 = vld [vmem:[%s3977_s1 + $0xc] sm:$0xf0]  ;;  %v2519_v31 = vld [vmem:[%s3977_s1 + $0x4] sm:$0xf]  ;;  %v3106_v32 = vor.u32 %v2524_v21, %v2133_v23  ;;  %v2109_v33 = vld [vmem:[%s3977_s1 + $0x10] sm:$0xf0] }
  0x2a   : > { %554 = vmatpush.bf16.msra.mxu1 %v3020_v58  ;;  %567 = vmatpush.bf16.msra.mxu2 %v3022_v59  ;;  %v2115_v36 = vld [vmem:[%s3977_s1 + $0x8] sm:$0xf]  ;;  %v2522_v37 = vld [vmem:[%s3977_s1 + $0x14] sm:$0xf0]  ;;  %v2520_v38 = vld [vmem:[%s3977_s1 + $0xc] sm:$0xf]  ;;  %v3124_v41 = vor.u32 %v2521_v29, %v2107_v28  ;;  %v3128_v43 = vor.u32 %v2519_v31, %v2109_v33 }
  0x2b   : > { %580 = vmatpush.bf16.msra.mxu3 %v3034_v63  ;;  %v2117_v40 = vld [vmem:[%s3977_s1 + $0x18] sm:$0xf0]  ;;  %v374_v42 = vld [vmem:[#allocation2] sm:$0x3]  ;;  %v3130_v44 = vor.u32 %v2522_v37, %v2115_v36  ;;  %vm596_vm0 = vcmask 1041408   ;;  %vm598_vm1 = vcmask 1045508  }
  0x2c   : > { %v3133_v48 = vor.u32 %v2520_v38, %v2117_v40  ;;  %v376_v49 = vpack.c.bf16 %v374_v42, %v374_v42  ;;  %vm600_vm2 = vcmask 1043456   ;;  %v370_v1 = vld [vmem:[%s2844_s27] sm:$0xff] }
  0x2d   : > { %542 = vmatpush.bf16.msra.mxu0 %v3052_v6 }
  0x2e   : > { %555 = vmatpush.bf16.msra.mxu1 %v3056_v7  ;;  %568 = vmatpush.bf16.msra.mxu2 %v3058_v10 }
  0x2f   : > { %581 = vmatpush.bf16.msra.mxu3 %v3070_v15 }
  0x31   : > { %543 = vmatpush.bf16.msra.mxu0 %v3088_v24 }
  0x32   : > { %556 = vmatpush.bf16.msra.mxu1 %v3092_v25  ;;  %569 = vmatpush.bf16.msra.mxu2 %v3094_v27 }
  0x33   : > { %582 = vmatpush.bf16.msra.mxu3 %v3106_v32 }
  0x35   : > { %544 = vmatpush.bf16.msra.mxu0 %v3124_v41 }
  0x36   : > { %557 = vmatpush.bf16.msra.mxu1 %v3128_v43  ;;  %570 = vmatpush.bf16.msra.mxu2 %v3130_v44 }
  0x37   : > { %583 = vmatpush.bf16.msra.mxu3 %v3133_v48 }
  0x38   : > { %545 = vmatmul.bf16.vlgmr.msra.gmra.mxu0 %v376_v49 }
  0x39   : > { %676 = vmatpush.bf16.msrb.mxu0 %v2860_v4  ;;  %558 = vmatmul.bf16.vlgmr.msra.gmra.mxu1 %v376_v49 }
  0x3a   : > { %689 = vmatpush.bf16.msrb.mxu1 %v2871_v8  ;;  %571 = vmatmul.bf16.vlgmr.msra.gmra.mxu2 %v376_v49 }
  0x3b   : > { %584 = vmatmul.bf16.vlgmr.msra.gmra.mxu3 %v376_v49  ;;  %702 = vmatpush.bf16.msrb.mxu2 %v2873_v9 }
  0x3c   : > { %715 = vmatpush.bf16.msrb.mxu3 %v2885_v13 }
  0x3d   : > { %677 = vmatpush.bf16.msrb.mxu0 %v2898_v17 }
  0x3e   : > { %690 = vmatpush.bf16.msrb.mxu1 %v2900_v18 }
  0x3f   : > { %703 = vmatpush.bf16.msrb.mxu2 %v2912_v22 }
  0x40   : > { %716 = vmatpush.bf16.msrb.mxu3 %v2923_v26 }
  0x41   : > { %678 = vmatpush.bf16.msrb.mxu0 %v2935_v30 }
  0x42   : > { %691 = vmatpush.bf16.msrb.mxu1 %v2948_v34 }
  0x43   : > { %704 = vmatpush.bf16.msrb.mxu2 %v2950_v35 }
  0x44   : > { %717 = vmatpush.bf16.msrb.mxu3 %v2962_v39 }
  0x45   : > { %679 = vmatpush.bf16.msrb.mxu0 %v2980_v45 }
  0x46   : > { %692 = vmatpush.bf16.msrb.mxu1 %v2984_v46 }
  0x47   : > { %705 = vmatpush.bf16.msrb.mxu2 %v2986_v47 }
  0x48   : > { %718 = vmatpush.bf16.msrb.mxu3 %v2998_v51 }
  0x49   : > { %680 = vmatpush.bf16.msrb.mxu0 %v3016_v57 }
  0x4a   : > { %693 = vmatpush.bf16.msrb.mxu1 %v3020_v58 }
  0x4b   : > { %706 = vmatpush.bf16.msrb.mxu2 %v3022_v59 }
  0x4c   : > { %719 = vmatpush.bf16.msrb.mxu3 %v3034_v63 }
  0x4d   : > { %681 = vmatpush.bf16.msrb.mxu0 %v3052_v6 }
  0x4e   : > { %694 = vmatpush.bf16.msrb.mxu1 %v3056_v7 }
  0x4f   : > { %707 = vmatpush.bf16.msrb.mxu2 %v3058_v10 }
  0x50   : > { %720 = vmatpush.bf16.msrb.mxu3 %v3070_v15 }
  0x51   : > { %682 = vmatpush.bf16.msrb.mxu0 %v3088_v24 }
  0x52   : > { %695 = vmatpush.bf16.msrb.mxu1 %v3092_v25 }
  0x53   : > { %708 = vmatpush.bf16.msrb.mxu2 %v3094_v27 }
  0x54   : > { %721 = vmatpush.bf16.msrb.mxu3 %v3106_v32 }
  0x55   : > { %683 = vmatpush.bf16.msrb.mxu0 %v3124_v41 }
  0x56   : > { %696 = vmatpush.bf16.msrb.mxu1 %v3128_v43 }
  0x57   : > { %709 = vmatpush.bf16.msrb.mxu2 %v3130_v44 }
  0x58   : > { %722 = vmatpush.bf16.msrb.mxu3 %v3133_v48 }
  0x59   : > { %812 = vmatpush.bf16.msra.mxu0 %v2860_v4 }
  0x5a   : > { %825 = vmatpush.bf16.msra.mxu1 %v2871_v8 }
  0x5b   : > { %838 = vmatpush.bf16.msra.mxu2 %v2873_v9 }
  0x5c   : > { %851 = vmatpush.bf16.msra.mxu3 %v2885_v13 }
  0x5d   : > { %813 = vmatpush.bf16.msra.mxu0 %v2898_v17 }
  0x5e   : > { %826 = vmatpush.bf16.msra.mxu1 %v2900_v18 }
  0x5f   : > { %839 = vmatpush.bf16.msra.mxu2 %v2912_v22 }
  0x60   : > { %852 = vmatpush.bf16.msra.mxu3 %v2923_v26 }
  0x61   : > { %814 = vmatpush.bf16.msra.mxu0 %v2935_v30 }
  0x62   : > { %827 = vmatpush.bf16.msra.mxu1 %v2948_v34 }
  0x63   : > { %840 = vmatpush.bf16.msra.mxu2 %v2950_v35 }
  0x64   : > { %853 = vmatpush.bf16.msra.mxu3 %v2962_v39 }
  0x65   : > { %815 = vmatpush.bf16.msra.mxu0 %v2980_v45 }
  0x66   : > { %828 = vmatpush.bf16.msra.mxu1 %v2984_v46 }
  0x67   : > { %841 = vmatpush.bf16.msra.mxu2 %v2986_v47 }
  0x68   : > { %854 = vmatpush.bf16.msra.mxu3 %v2998_v51 }
  0x69   : > { %816 = vmatpush.bf16.msra.mxu0 %v3016_v57 }
  0x6a   : > { %829 = vmatpush.bf16.msra.mxu1 %v3020_v58 }
  0x6b   : > { %842 = vmatpush.bf16.msra.mxu2 %v3022_v59 }
  0x6c   : > { %855 = vmatpush.bf16.msra.mxu3 %v3034_v63 }
  0x6d   : > { %817 = vmatpush.bf16.msra.mxu0 %v3052_v6 }
  0x6e   : > { %830 = vmatpush.bf16.msra.mxu1 %v3056_v7 }
  0x6f   : > { %843 = vmatpush.bf16.msra.mxu2 %v3058_v10 }
  0x70   : > { %856 = vmatpush.bf16.msra.mxu3 %v3070_v15 }
  0x71   : > { %818 = vmatpush.bf16.msra.mxu0 %v3088_v24 }
  0x72   : > { %831 = vmatpush.bf16.msra.mxu1 %v3092_v25 }
  0x73   : > { %844 = vmatpush.bf16.msra.mxu2 %v3094_v27 }
  0x74   : > { %857 = vmatpush.bf16.msra.mxu3 %v3106_v32 }
  0x75   : > { %819 = vmatpush.bf16.msra.mxu0 %v3124_v41 }
  0x76   : > { %832 = vmatpush.bf16.msra.mxu1 %v3128_v43 }
  0x77   : > { %845 = vmatpush.bf16.msra.mxu2 %v3130_v44 }
  0x78   : > { %858 = vmatpush.bf16.msra.mxu3 %v3133_v48 }
  0xb5   : > { %v546_v50 = vpop.f32.mrf.mxu0 }
  0xb6   : > { %v559_v52 = vpop.f32.mrf.mxu1 }
  0xb7   : > { %v593_v53 = vrot.slane %v559_v52, 6 }
  0xb9   : > { %v597_v61 = vsel %vm596_vm0, %v546_v50, %v593_v53 }
  0xbd   : > { %v572_v54 = vpop.f32.mrf.mxu2  ;;  %v548_v60 = vpop.f32.mrf.mxu0 }
  0xbe   : > { %v594_v55 = vrot.slane %v572_v54, 4  ;;  %v585_v56 = vpop.f32.mrf.mxu3  ;;  %v561_v0 = vpop.f32.mrf.mxu1 }
  0xbf   : > { %v595_v62 = vrot.slane %v585_v56, 2 }
  0xc1   : > { %v599_v2 = vsel %vm598_vm1, %v594_v55, %v595_v62 }
  0xc2   : > { %v601_v3 = vsel %vm600_vm2, %v597_v61, %v599_v2 }
  0xc3   : > { %v603_v5 = vadd.f32 %v601_v3, %v370_v1 }
  0xc5   : > { %v2233_v11 = vmul.f32 -1.442695, %v603_v5  ;;  %v624_v12 = vrot.slane %v603_v5, 2  ;;  %v648_v14 = vrot.slane %v603_v5, 6  ;;  %v574_v16 = vpop.f32.mrf.mxu2  ;;  %v645_v42 = vrot.slane %v603_v5, 4 }
  0xc6   : > { %v587_v19 = vpop.f32.mrf.mxu3 }
  0xc7   : > { %2640 = vpow2.f32 %v2233_v11  ;;  %v2234_v20 = vmul.f32 -1.442695, %v624_v12  ;;  %v2235_v21 = vmul.f32 -1.442695, %v648_v14  ;;  %v375_v12 = vld [vmem:[#allocation3] sm:$0x3] }
  0xc9   : > { %2642 = vpow2.f32 %v2234_v20 }
  0xca   : > { %2644 = vpow2.f32 %v2235_v21 }
  0xcd   : > { %v2641_v23 = vpop.eup %2640 }
  0xce   : > { %v607_v28 = vadd.f32 1.0, %v2641_v23 }
  0xcf   : > { %v2643_v29 = vpop.eup %2642 }
  0xd0   : > { %v2645_v31 = vpop.eup %2644  ;;  %2646 = vrcp.f32 %v607_v28  ;;  %v629_v33 = vadd.f32 1.0, %v2643_v29  ;;  %v619_v53 = vand.u32 2147483648, %v607_v28  ;;  %v617_v60 = vand.u32 2147483647, %v607_v28 }
  0xd1   : > { %v653_v36 = vadd.f32 1.0, %v2645_v31  ;;  %vm613_vm4 = vweird.f32 %v607_v28 }
  0xd2   : > { %2648 = vrcp.f32 %v629_v33  ;;  %v641_v61 = vand.u32 2147483648, %v629_v33  ;;  %v639_v1 = vand.u32 2147483647, %v629_v33  ;;  %v620_v2 = vor.u32 1.1754944e-38, %v619_v53 }
  0xd3   : > { %2650 = vrcp.f32 %v653_v36  ;;  %vm618_vm7 = vcmp.eq.f32.partialorder %v617_v60, 8.507059e+37  ;;  %vm635_vm8 = vweird.f32 %v629_v33  ;;  %vm659_vm12 = vweird.f32 %v653_v36 }
  0xd4   : > { %2652 = vtanh.f32 %v645_v42  ;;  %v642_v16 = vor.u32 1.1754944e-38, %v641_v61  ;;  %vm640_vm10 = vcmp.eq.f32.partialorder %v639_v1, 8.507059e+37  ;;  %v665_v42 = vand.u32 2147483648, %v653_v36 }
  0xd6   : > { %v2647_v37 = vpop.eup %2646 }
  0xd7   : > { %v609_v38 = vmul.f32 %v2647_v37, %v607_v28  ;;  %vm614_vm3 = vweird.f32 %v2647_v37 }
  0xd8   : > { %v2649_v40 = vpop.eup %2648  ;;  %vm615_vm6 = vmor %vm613_vm4, %vm614_vm3 }
  0xd9   : > { %v2651_v49 = vpop.eup %2650  ;;  %v610_v50 = vsub.f32 1.0, %v609_v38  ;;  %v631_v52 = vmul.f32 %v2649_v40, %v629_v33  ;;  %vm636_vm5 = vweird.f32 %v2649_v40  ;;  %v663_v33 = vand.u32 2147483647, %v653_v36 }
  0xda   : > { %v655_v54 = vmul.f32 %v2651_v49, %v653_v36  ;;  %vm637_vm9 = vmor %vm635_vm8, %vm636_vm5  ;;  %v2653_v20 = vpop.eup %2652  ;;  %vm660_vm11 = vweird.f32 %v2651_v49 }
  0xdb   : > { %v632_v55 = vsub.f32 1.0, %v631_v52  ;;  %v611_v56 = vmul.f32 %v2647_v37, %v610_v50  ;;  %vm661_vm13 = vmor %vm659_vm12, %vm660_vm11  ;;  %v666_v50 = vor.u32 1.1754944e-38, %v665_v42  ;;  %vm664_vm14 = vcmp.eq.f32.partialorder %v663_v33, 8.507059e+37 }
  0xdc   : > { %v656_v3 = vsub.f32 1.0, %v655_v54 }
  0xdd   : > { %v612_v62 = vadd.f32 %v2647_v37, %v611_v56  ;;  %v633_v0 = vmul.f32 %v2649_v40, %v632_v55 }
  0xde   : > { %v657_v23 = vmul.f32 %v2651_v49, %v656_v3 }
  0xdf   : > { %v616_v5 = vsel %vm615_vm6, %v2647_v37, %v612_v62  ;;  %v634_v11 = vadd.f32 %v2649_v40, %v633_v0 }
  0xe0   : > { %v621_v14 = vsel %vm618_vm7, %v620_v2, %v616_v5  ;;  %v658_v38 = vadd.f32 %v2651_v49, %v657_v23 }
  0xe1   : > { %v638_v19 = vsel %vm637_vm9, %v2649_v40, %v634_v11  ;;  %v670_v29 = vmul.f32 %v2653_v20, %v621_v14 }
  0xe2   : > { %v643_v21 = vsel %vm640_vm10, %v642_v16, %v638_v19  ;;  %v662_v37 = vsel %vm661_vm13, %v2651_v49, %v658_v38 }
  0xe3   : > { %v669_v28 = vmul.f32 %v643_v21, %v375_v12  ;;  %v667_v52 = vsel %vm664_vm14, %v666_v50, %v662_v37 }
  0xe5   : > { %v3207_v31 = vadd.f32 %v670_v29, %v669_v28 }
  0xe7   : > { %2654 = vtanh.f32 %v3207_v31 }
  0xed   : > { %v2655_v40 = vpop.eup %2654 }
  0xee   : > { %v673_v53 = vmul.f32 %v2655_v40, %v667_v52 }
  0xf0   : > { %674 = vst [vmem:[#allocation6] sm:$0x3] %v673_v53  ;;  %v675_v54 = vpack.c.bf16 %v673_v53, %v673_v53 }
  0xf2   : > { %684 = vmatmul.bf16.vlgmr.msrb.gmra.mxu0 %v675_v54  ;;  %697 = vmatmul.bf16.vlgmr.msrb.gmra.mxu1 %v675_v54 }
  0xf3   : > { %710 = vmatmul.bf16.vlgmr.msrb.gmra.mxu2 %v675_v54  ;;  %723 = vmatmul.bf16.vlgmr.msrb.gmra.mxu3 %v675_v54 }
  0xf4   : > { %948 = vmatpush.bf16.msrb.mxu0 %v2860_v4  ;;  %961 = vmatpush.bf16.msrb.mxu1 %v2871_v8 }
  0xf5   : > { %974 = vmatpush.bf16.msrb.mxu2 %v2873_v9  ;;  %987 = vmatpush.bf16.msrb.mxu3 %v2885_v13 }
  0xf8   : > { %949 = vmatpush.bf16.msrb.mxu0 %v2898_v17  ;;  %962 = vmatpush.bf16.msrb.mxu1 %v2900_v18 }
  0xf9   : > { %975 = vmatpush.bf16.msrb.mxu2 %v2912_v22  ;;  %988 = vmatpush.bf16.msrb.mxu3 %v2923_v26 }
  0xfc   : > { %950 = vmatpush.bf16.msrb.mxu0 %v2935_v30  ;;  %963 = vmatpush.bf16.msrb.mxu1 %v2948_v34  ;;  %v371_v34 = vld [vmem:[%s2844_s27 + $0x8] sm:$0xff] }
  0xfd   : > { %976 = vmatpush.bf16.msrb.mxu2 %v2950_v35  ;;  %989 = vmatpush.bf16.msrb.mxu3 %v2962_v39 }
 0x100   : > { %951 = vmatpush.bf16.msrb.mxu0 %v2980_v45  ;;  %964 = vmatpush.bf16.msrb.mxu1 %v2984_v46 }
 0x101   : > { %977 = vmatpush.bf16.msrb.mxu2 %v2986_v47  ;;  %990 = vmatpush.bf16.msrb.mxu3 %v2998_v51 }
 0x104   : > { %952 = vmatpush.bf16.msrb.mxu0 %v3016_v57  ;;  %965 = vmatpush.bf16.msrb.mxu1 %v3020_v58 }
 0x105   : > { %978 = vmatpush.bf16.msrb.mxu2 %v3022_v59  ;;  %991 = vmatpush.bf16.msrb.mxu3 %v3034_v63 }
 0x108   : > { %953 = vmatpush.bf16.msrb.mxu0 %v3052_v6  ;;  %966 = vmatpush.bf16.msrb.mxu1 %v3056_v7 }
 0x109   : > { %979 = vmatpush.bf16.msrb.mxu2 %v3058_v10  ;;  %992 = vmatpush.bf16.msrb.mxu3 %v3070_v15 }
 0x10c   : > { %954 = vmatpush.bf16.msrb.mxu0 %v3088_v24  ;;  %967 = vmatpush.bf16.msrb.mxu1 %v3092_v25 }
 0x10d   : > { %980 = vmatpush.bf16.msrb.mxu2 %v3094_v27  ;;  %993 = vmatpush.bf16.msrb.mxu3 %v3106_v32 }
 0x110   : > { %955 = vmatpush.bf16.msrb.mxu0 %v3124_v41  ;;  %968 = vmatpush.bf16.msrb.mxu1 %v3128_v43 }
 0x111   : > { %981 = vmatpush.bf16.msrb.mxu2 %v3130_v44  ;;  %994 = vmatpush.bf16.msrb.mxu3 %v3133_v48 }
 0x16f   : > { %v685_v4 = vpop.f32.mrf.mxu0  ;;  %v698_v8 = vpop.f32.mrf.mxu1 }
 0x170   : > { %v732_v9 = vrot.slane %v698_v8, 6 }
 0x172   : > { %v735_v35 = vsel %vm596_vm0, %v685_v4, %v732_v9 }
 0x176   : > { %v711_v13 = vpop.f32.mrf.mxu2  ;;  %v724_v17 = vpop.f32.mrf.mxu3 }
 0x177   : > { %v733_v18 = vrot.slane %v711_v13, 4  ;;  %v734_v22 = vrot.slane %v724_v17, 2  ;;  %v687_v26 = vpop.f32.mrf.mxu0  ;;  %v700_v30 = vpop.f32.mrf.mxu1 }
 0x179   : > { %v736_v39 = vsel %vm598_vm1, %v733_v18, %v734_v22 }
 0x17a   : > { %v737_v45 = vsel %vm600_vm2, %v735_v35, %v736_v39  ;;  %v372_v35 = vld [vmem:[%s2844_s27 + $0x10] sm:$0xff] }
 0x17b   : > { %v739_v46 = vadd.f32 %v737_v45, %v371_v34 }
 0x17d   : > { %v2236_v47 = vmul.f32 -1.442695, %v739_v46  ;;  %v760_v51 = vrot.slane %v739_v46, 2  ;;  %v784_v57 = vrot.slane %v739_v46, 6  ;;  %v781_v44 = vrot.slane %v739_v46, 4 }
 0x17e   : > { %v713_v58 = vpop.f32.mrf.mxu2  ;;  %v726_v59 = vpop.f32.mrf.mxu3 }
 0x17f   : > { %2656 = vpow2.f32 %v2236_v47  ;;  %v2237_v63 = vmul.f32 -1.442695, %v760_v51  ;;  %v2238_v6 = vmul.f32 -1.442695, %v784_v57 }
 0x181   : > { %2658 = vpow2.f32 %v2237_v63 }
 0x182   : > { %2660 = vpow2.f32 %v2238_v6 }
 0x185   : > { %v2657_v7 = vpop.eup %2656 }
 0x186   : > { %v743_v10 = vadd.f32 1.0, %v2657_v7 }
 0x187   : > { %v2659_v15 = vpop.eup %2658 }
 0x188   : > { %v2661_v24 = vpop.eup %2660  ;;  %2662 = vrcp.f32 %v743_v10  ;;  %v765_v25 = vadd.f32 1.0, %v2659_v15  ;;  %v755_v55 = vand.u32 2147483648, %v743_v10  ;;  %v753_v62 = vand.u32 2147483647, %v743_v10 }
 0x189   : > { %v789_v27 = vadd.f32 1.0, %v2661_v24  ;;  %vm749_vm3 = vweird.f32 %v743_v10 }
 0x18a   : > { %2664 = vrcp.f32 %v765_v25  ;;  %v777_v0 = vand.u32 2147483648, %v765_v25  ;;  %v775_v3 = vand.u32 2147483647, %v765_v25  ;;  %v756_v5 = vor.u32 1.1754944e-38, %v755_v55 }
 0x18b   : > { %2666 = vrcp.f32 %v789_v27  ;;  %vm754_vm6 = vcmp.eq.f32.partialorder %v753_v62, 8.507059e+37  ;;  %vm771_vm7 = vweird.f32 %v765_v25  ;;  %v801_v37 = vand.u32 2147483648, %v789_v27 }
 0x18c   : > { %2668 = vtanh.f32 %v781_v44  ;;  %v778_v19 = vor.u32 1.1754944e-38, %v777_v0  ;;  %vm776_vm9 = vcmp.eq.f32.partialorder %v775_v3, 8.507059e+37  ;;  %vm795_vm11 = vweird.f32 %v789_v27 }
 0x18d   : > { %v799_v50 = vand.u32 2147483647, %v789_v27  ;;  %v802_v52 = vor.u32 1.1754944e-38, %v801_v37 }
 0x18e   : > { %v2663_v32 = vpop.eup %2662 }
 0x18f   : > { %v745_v41 = vmul.f32 %v2663_v32, %v743_v10  ;;  %vm750_vm15 = vweird.f32 %v2663_v32  ;;  %vm800_vm13 = vcmp.eq.f32.partialorder %v799_v50, 8.507059e+37 }
 0x190   : > { %v2665_v43 = vpop.eup %2664  ;;  %vm751_vm5 = vmor %vm749_vm3, %vm750_vm15 }
 0x191   : > { %v2667_v48 = vpop.eup %2666  ;;  %v746_v36 = vsub.f32 1.0, %v745_v41  ;;  %v767_v49 = vmul.f32 %v2665_v43, %v765_v25  ;;  %vm772_vm4 = vweird.f32 %v2665_v43 }
 0x192   : > { %v791_v56 = vmul.f32 %v2667_v48, %v789_v27  ;;  %vm773_vm8 = vmor %vm771_vm7, %vm772_vm4  ;;  %v2669_v21 = vpop.eup %2668  ;;  %vm796_vm10 = vweird.f32 %v2667_v48 }
 0x193   : > { %v768_v60 = vsub.f32 1.0, %v767_v49  ;;  %v747_v61 = vmul.f32 %v2663_v32, %v746_v36  ;;  %vm797_vm12 = vmor %vm795_vm11, %vm796_vm10 }
 0x194   : > { %v792_v11 = vsub.f32 1.0, %v791_v56 }
 0x195   : > { %v748_v1 = vadd.f32 %v2663_v32, %v747_v61  ;;  %v769_v2 = vmul.f32 %v2665_v43, %v768_v60 }
 0x196   : > { %v793_v28 = vmul.f32 %v2667_v48, %v792_v11 }
 0x197   : > { %v752_v12 = vsel %vm751_vm5, %v2663_v32, %v748_v1  ;;  %v770_v14 = vadd.f32 %v2665_v43, %v769_v2 }
 0x198   : > { %v757_v16 = vsel %vm754_vm6, %v756_v5, %v752_v12  ;;  %v794_v33 = vadd.f32 %v2667_v48, %v793_v28 }
 0x199   : > { %v774_v20 = vsel %vm773_vm8, %v2665_v43, %v770_v14  ;;  %v806_v38 = vmul.f32 %v2669_v21, %v757_v16 }
 0x19a   : > { %v779_v23 = vsel %vm776_vm9, %v778_v19, %v774_v20  ;;  %v798_v40 = vsel %vm797_vm12, %v2667_v48, %v794_v33 }
 0x19b   : > { %v805_v29 = vmul.f32 %v779_v23, %v3207_v31  ;;  %v803_v54 = vsel %vm800_vm13, %v802_v52, %v798_v40 }
 0x19d   : > { %v3247_v42 = vadd.f32 %v806_v38, %v805_v29 }
 0x19f   : > { %2670 = vtanh.f32 %v3247_v42 }
 0x1a5   : > { %v2671_v53 = vpop.eup %2670 }
 0x1a6   : > { %v809_v4 = vmul.f32 %v2671_v53, %v803_v54 }
 0x1a8   : > { %810 = vst [vmem:[#allocation6 + $0x2] sm:$0x3] %v809_v4  ;;  %v811_v31 = vpack.c.bf16 %v809_v4, %v809_v4 }
 0x1aa   : > { %820 = vmatmul.bf16.vlgmr.msra.gmra.mxu0 %v811_v31  ;;  %833 = vmatmul.bf16.vlgmr.msra.gmra.mxu1 %v811_v31 }
 0x1ab   : > { %846 = vmatmul.bf16.vlgmr.msra.gmra.mxu2 %v811_v31  ;;  %859 = vmatmul.bf16.vlgmr.msra.gmra.mxu3 %v811_v31 }
 0x227   : > { %v821_v8 = vpop.f32.mrf.mxu0  ;;  %v834_v9 = vpop.f32.mrf.mxu1 }
 0x228   : > { %v868_v13 = vrot.slane %v834_v9, 6 }
 0x22a   : > { %v871_v39 = vsel %vm596_vm0, %v821_v8, %v868_v13  ;;  %v2581_v13 = vld [vmem:[%s3978_s2 + $0xec] sm:$0xf0] }
 0x22e   : > { %v847_v17 = vpop.f32.mrf.mxu2  ;;  %v860_v18 = vpop.f32.mrf.mxu3 }
 0x22f   : > { %v869_v22 = vrot.slane %v847_v17, 4  ;;  %v870_v26 = vrot.slane %v860_v18, 2  ;;  %v823_v30 = vpop.f32.mrf.mxu0  ;;  %v836_v34 = vpop.f32.mrf.mxu1  ;;  %v2579_v17 = vld [vmem:[%s3978_s2 + $0xe4] sm:$0xf] }
 0x230   : > { %v2582_v30 = vld [vmem:[%s3978_s2 + $0xf4] sm:$0xf0] }
 0x231   : > { %v872_v45 = vsel %vm598_vm1, %v869_v22, %v870_v26  ;;  %v2361_v22 = vld [vmem:[%s3978_s2 + $0xf0] sm:$0xf0]  ;;  %v2367_v26 = vld [vmem:[%s3978_s2 + $0xe8] sm:$0xf] }
 0x232   : > { %v873_v46 = vsel %vm600_vm2, %v871_v39, %v872_v45  ;;  %v2364_v34 = vor.u32 %v2579_v17, %v2361_v22  ;;  %v2580_v39 = vld [vmem:[%s3978_s2 + $0xec] sm:$0xf]  ;;  %v2369_v45 = vld [vmem:[%s3978_s2 + $0xf8] sm:$0xf0] }
 0x233   : > { %v875_v47 = vadd.f32 %v873_v46, %v372_v35  ;;  %v2368_v35 = vor.u32 %v2582_v30, %v2367_v26  ;;  %v2372_v46 = vor.u32 %v2580_v39, %v2369_v45  ;;  %v2305_v22 = vld [vmem:[%s3978_s2 + $0x78] sm:$0xf0]  ;;  %v2279_v39 = vld [vmem:[%s3978_s2 + $0x40] sm:$0xf]  ;;  %v2561_v45 = vld [vmem:[%s3978_s2 + $0x4c] sm:$0xf0] }
 0x234   : > { %1269 = vmatpush.bf16.msra.mxu1 %v2364_v34  ;;  %v373_v26 = vld [vmem:[%s2844_s27 + $0x18] sm:$0xff] }
 0x235   : > { %v2239_v51 = vmul.f32 -1.442695, %v875_v47  ;;  %v896_v57 = vrot.slane %v875_v47, 2  ;;  %v920_v58 = vrot.slane %v875_v47, 6  ;;  %v917_v48 = vrot.slane %v875_v47, 4  ;;  %1282 = vmatpush.bf16.msra.mxu2 %v2368_v35  ;;  %1295 = vmatpush.bf16.msra.mxu3 %v2372_v46 }
 0x236   : > { %v849_v59 = vpop.f32.mrf.mxu2  ;;  %v862_v63 = vpop.f32.mrf.mxu3  ;;  %v2343_v47 = vld [vmem:[%s3978_s2 + $0xc0] sm:$0xf]  ;;  %v2559_v46 = vld [vmem:[%s3978_s2 + $0x44] sm:$0xf] }
 0x237   : > { %2672 = vpow2.f32 %v2239_v51  ;;  %v2240_v6 = vmul.f32 -1.442695, %v896_v57  ;;  %v2241_v7 = vmul.f32 -1.442695, %v920_v58  ;;  %v2577_v51 = vld [vmem:[%s3978_s2 + $0xcc] sm:$0xf0] }
 0x238   : > { %v2575_v57 = vld [vmem:[%s3978_s2 + $0xc4] sm:$0xf]  ;;  %v2344_v58 = vor.u32 %v2577_v51, %v2343_v47  ;;  %v2345_v59 = vld [vmem:[%s3978_s2 + $0xd0] sm:$0xf0]  ;;  %v2351_v63 = vld [vmem:[%s3978_s2 + $0xc8] sm:$0xf]  ;;  %v2280_v51 = vor.u32 %v2561_v45, %v2279_v39 }
 0x239   : > { %2674 = vpow2.f32 %v2240_v6  ;;  %v2578_v6 = vld [vmem:[%s3978_s2 + $0xd4] sm:$0xf0]  ;;  %v2473_v45 = vld [vmem:[%s3979_s3 + $0xd0] sm:$0xf0] }
 0x23a   : > { %2676 = vpow2.f32 %v2241_v7  ;;  %v2348_v7 = vor.u32 %v2575_v57, %v2345_v59  ;;  %v2281_v57 = vld [vmem:[%s3978_s2 + $0x50] sm:$0xf0]  ;;  %v2562_v59 = vld [vmem:[%s3978_s2 + $0x54] sm:$0xf0] }
 0x23c   : > { %1270 = vmatpush.bf16.msra.mxu1 %v2348_v7 }
 0x23d   : > { %v2673_v10 = vpop.eup %2672 }
 0x23e   : > { %v879_v15 = vadd.f32 1.0, %v2673_v10  ;;  %v2352_v10 = vor.u32 %v2578_v6, %v2351_v63  ;;  %v2284_v6 = vor.u32 %v2559_v46, %v2281_v57 }
 0x23f   : > { %v2675_v24 = vpop.eup %2674 }
 0x240   : > { %v2677_v25 = vpop.eup %2676  ;;  %2678 = vrcp.f32 %v879_v15  ;;  %v901_v27 = vadd.f32 1.0, %v2675_v24  ;;  %v891_v56 = vand.u32 2147483648, %v879_v15  ;;  %v889_v0 = vand.u32 2147483647, %v879_v15  ;;  %v2353_v24 = vld [vmem:[%s3978_s2 + $0xd8] sm:$0xf0]  ;;  %1283 = vmatpush.bf16.msra.mxu2 %v2352_v10 }
 0x241   : > { %v925_v32 = vadd.f32 1.0, %v2677_v25  ;;  %vm885_vm15 = vweird.f32 %v879_v15  ;;  %v2560_v10 = vld [vmem:[%s3978_s2 + $0x4c] sm:$0xf] }
 0x242   : > { %2680 = vrcp.f32 %v901_v27  ;;  %v913_v1 = vand.u32 2147483648, %v901_v27  ;;  %v911_v5 = vand.u32 2147483647, %v901_v27  ;;  %v892_v11 = vor.u32 1.1754944e-38, %v891_v56 }
 0x243   : > { %2682 = vrcp.f32 %v925_v32  ;;  %vm890_vm5 = vcmp.eq.f32.partialorder %v889_v0, 8.507059e+37  ;;  %vm907_vm6 = vweird.f32 %v901_v27  ;;  %v937_v40 = vand.u32 2147483648, %v925_v32 }
 0x244   : > { %2684 = vtanh.f32 %v917_v48  ;;  %v914_v20 = vor.u32 1.1754944e-38, %v913_v1  ;;  %vm912_vm8 = vcmp.eq.f32.partialorder %v911_v5, 8.507059e+37  ;;  %vm931_vm10 = vweird.f32 %v925_v32  ;;  %v2335_v48 = vld [vmem:[%s3978_s2 + $0xa8] sm:$0xf]  ;;  %v2311_v1 = vld [vmem:[%s3978_s2 + $0x80] sm:$0xf] }
 0x245   : > { %v935_v52 = vand.u32 2147483647, %v925_v32  ;;  %v938_v54 = vor.u32 1.1754944e-38, %v937_v40 }
 0x246   : > { %v2679_v41 = vpop.eup %2678 }
 0x247   : > { %v881_v43 = vmul.f32 %v2679_v41, %v879_v15  ;;  %vm886_vm14 = vweird.f32 %v2679_v41  ;;  %vm936_vm12 = vcmp.eq.f32.partialorder %v935_v52, 8.507059e+37  ;;  %v2576_v15 = vld [vmem:[%s3978_s2 + $0xcc] sm:$0xf] }
 0x248   : > { %v2681_v44 = vpop.eup %2680  ;;  %vm887_vm4 = vmor %vm885_vm15, %vm886_vm14  ;;  %v2356_v25 = vor.u32 %v2576_v15, %v2353_v24  ;;  %v2289_v15 = vld [vmem:[%s3978_s2 + $0x58] sm:$0xf0] }
 0x249   : > { %v2683_v36 = vpop.eup %2682  ;;  %v882_v49 = vsub.f32 1.0, %v881_v43  ;;  %v903_v55 = vmul.f32 %v2681_v44, %v901_v27  ;;  %vm908_vm3 = vweird.f32 %v2681_v44  ;;  %v2327_v27 = vld [vmem:[%s3978_s2 + $0xa0] sm:$0xf]  ;;  %v2292_v24 = vor.u32 %v2560_v10, %v2289_v15  ;;  %v2608_v10 = vld [vmem:[%s3979_s3 + $0xcc] sm:$0xf] }
 0x24a   : > { %v927_v60 = vmul.f32 %v2683_v36, %v925_v32  ;;  %vm909_vm7 = vmor %vm907_vm6, %vm908_vm3  ;;  %v2685_v23 = vpop.eup %2684  ;;  %vm932_vm9 = vweird.f32 %v2683_v36  ;;  %v2573_v32 = vld [vmem:[%s3978_s2 + $0xac] sm:$0xf0]  ;;  %1296 = vmatpush.bf16.msra.mxu3 %v2356_v25  ;;  %v2481_v15 = vld [vmem:[%s3979_s3 + $0xd8] sm:$0xf0] }
 0x24b   : > { %v904_v61 = vsub.f32 1.0, %v903_v55  ;;  %v883_v62 = vmul.f32 %v2679_v41, %v882_v49  ;;  %vm933_vm11 = vmor %vm931_vm10, %vm932_vm9  ;;  %v2328_v43 = vor.u32 %v2573_v32, %v2327_v27 }
 0x24c   : > { %v928_v12 = vsub.f32 1.0, %v927_v60 }
 0x24d   : > { %v884_v2 = vadd.f32 %v2679_v41, %v883_v62  ;;  %v905_v3 = vmul.f32 %v2681_v44, %v904_v61  ;;  %v2572_v61 = vld [vmem:[%s3978_s2 + $0xac] sm:$0xf]  ;;  %v2337_v62 = vld [vmem:[%s3978_s2 + $0xb8] sm:$0xf0] }
 0x24e   : > { %v929_v29 = vmul.f32 %v2683_v36, %v928_v12  ;;  %v2340_v0 = vor.u32 %v2572_v61, %v2337_v62  ;;  %v2319_v12 = vld [vmem:[%s3978_s2 + $0x88] sm:$0xf] }
 0x24f   : > { %v888_v14 = vsel %vm887_vm4, %v2679_v41, %v884_v2  ;;  %v906_v16 = vadd.f32 %v2681_v44, %v905_v3  ;;  %v2571_v41 = vld [vmem:[%s3978_s2 + $0xa4] sm:$0xf]  ;;  %v2569_v2 = vld [vmem:[%s3978_s2 + $0x8c] sm:$0xf0]  ;;  %v2271_v62 = vld [vmem:[%s3978_s2 + $0x28] sm:$0xf] }
 0x250   : > { %v893_v19 = vsel %vm890_vm5, %v892_v11, %v888_v14  ;;  %v930_v50 = vadd.f32 %v2683_v36, %v929_v29  ;;  %v2567_v3 = vld [vmem:[%s3978_s2 + $0x84] sm:$0xf]  ;;  %1297 = vmatpush.bf16.msra.mxu3 %v2340_v0  ;;  %v2312_v5 = vor.u32 %v2569_v2, %v2311_v1  ;;  %v2313_v11 = vld [vmem:[%s3978_s2 + $0x90] sm:$0xf0]  ;;  %v2570_v14 = vld [vmem:[%s3978_s2 + $0x94] sm:$0xf0] }
 0x251   : > { %v910_v21 = vsel %vm909_vm7, %v2681_v44, %v906_v16  ;;  %v942_v33 = vmul.f32 %v2685_v23, %v893_v19  ;;  %v2329_v44 = vld [vmem:[%s3978_s2 + $0xb0] sm:$0xf0]  ;;  %v2316_v16 = vor.u32 %v2567_v3, %v2313_v11  ;;  %v2320_v19 = vor.u32 %v2570_v14, %v2319_v12  ;;  %v2295_v29 = vld [vmem:[%s3978_s2 + $0x60] sm:$0xf]  ;;  %v2558_v0 = vld [vmem:[%s3978_s2 + $0x34] sm:$0xf0] }
 0x252   : > { %v915_v28 = vsel %vm912_vm8, %v914_v20, %v910_v21  ;;  %v934_v53 = vsel %vm933_vm11, %v2683_v36, %v930_v50  ;;  %v2574_v36 = vld [vmem:[%s3978_s2 + $0xb4] sm:$0xf0]  ;;  %v2332_v56 = vor.u32 %v2571_v41, %v2329_v44  ;;  %v2568_v20 = vld [vmem:[%s3978_s2 + $0x8c] sm:$0xf]  ;;  %v2321_v21 = vld [vmem:[%s3978_s2 + $0x98] sm:$0xf0]  ;;  %v2272_v2 = vor.u32 %v2558_v0, %v2271_v62 }
 0x253   : > { %v941_v38 = vmul.f32 %v915_v28, %v3247_v42  ;;  %v939_v31 = vsel %vm936_vm12, %v938_v54, %v934_v53  ;;  %v2359_v42 = vld [vmem:[%s3978_s2 + $0xe0] sm:$0xf]  ;;  %v2336_v60 = vor.u32 %v2574_v36, %v2335_v48  ;;  %v2324_v28 = vor.u32 %v2568_v20, %v2321_v21  ;;  %v2297_v53 = vld [vmem:[%s3978_s2 + $0x70] sm:$0xf0]  ;;  %v2303_v54 = vld [vmem:[%s3978_s2 + $0x68] sm:$0xf] }
 0x254   : > { %v2360_v18 = vor.u32 %v2581_v13, %v2359_v42  ;;  %1271 = vmatpush.bf16.msra.mxu1 %v2332_v56  ;;  %v2263_v44 = vld [vmem:[%s3978_s2 + $0x20] sm:$0xf]  ;;  %v2557_v48 = vld [vmem:[%s3978_s2 + $0x2c] sm:$0xf0]  ;;  %v2555_v36 = vld [vmem:[%s3978_s2 + $0x24] sm:$0xf] }
 0x255   : > { %v3255_v37 = vadd.f32 %v942_v33, %v941_v38  ;;  %1284 = vmatpush.bf16.msra.mxu2 %v2336_v60  ;;  %v2565_v38 = vld [vmem:[%s3978_s2 + $0x6c] sm:$0xf0]  ;;  %v2563_v33 = vld [vmem:[%s3978_s2 + $0x64] sm:$0xf]  ;;  %1298 = vmatpush.bf16.msra.mxu3 %v2324_v28  ;;  %v2264_v56 = vor.u32 %v2557_v48, %v2263_v44  ;;  %v2265_v60 = vld [vmem:[%s3978_s2 + $0x30] sm:$0xf0] }
 0x256   : > { %1256 = vmatpush.bf16.msra.mxu0 %v2360_v18  ;;  %v2296_v52 = vor.u32 %v2565_v38, %v2295_v29  ;;  %v2300_v13 = vor.u32 %v2563_v33, %v2297_v53  ;;  %v2564_v18 = vld [vmem:[%s3978_s2 + $0x6c] sm:$0xf]  ;;  %v2268_v61 = vor.u32 %v2555_v36, %v2265_v60  ;;  %v2273_v3 = vld [vmem:[%s3978_s2 + $0x38] sm:$0xf0]  ;;  %v2553_v11 = vld [vmem:[%s3978_s2 + $0xc] sm:$0xf0] }
 0x257   : > { %2686 = vtanh.f32 %v3255_v37  ;;  %v2308_v30 = vor.u32 %v2564_v18, %v2305_v22  ;;  %v2556_v1 = vld [vmem:[%s3978_s2 + $0x2c] sm:$0xf]  ;;  %v2255_v20 = vld [vmem:[%s3978_s2 + $0x8] sm:$0xf]  ;;  %v2257_v29 = vld [vmem:[%s3978_s2 + $0x18] sm:$0xf0] }
 0x258   : > { %1272 = vmatpush.bf16.msra.mxu1 %v2316_v16  ;;  %v2276_v12 = vor.u32 %v2556_v1, %v2273_v3  ;;  %v2551_v16 = vld [vmem:[%s3978_s2 + $0x4] sm:$0xf]  ;;  %v2552_v28 = vld [vmem:[%s3978_s2 + $0xc] sm:$0xf]  ;;  %v2497_v18 = vld [vmem:[%s3979_s3 + $0xf8] sm:$0xf0] }
 0x259   : > { %1285 = vmatpush.bf16.msra.mxu2 %v2320_v19  ;;  %1299 = vmatpush.bf16.msra.mxu3 %v2308_v30  ;;  %v2249_v19 = vld [vmem:[%s3978_s2 + $0x10] sm:$0xf0]  ;;  %v2260_v33 = vor.u32 %v2552_v28, %v2257_v29  ;;  %v2471_v30 = vld [vmem:[%s3979_s3 + $0xc0] sm:$0xf]  ;;  %v2603_v44 = vld [vmem:[%s3979_s3 + $0xa4] sm:$0xf] }
 0x25a   : > { %1257 = vmatpush.bf16.msra.mxu0 %v2344_v58  ;;  %v2287_v58 = vld [vmem:[%s3978_s2 + $0x48] sm:$0xf]  ;;  %v2252_v21 = vor.u32 %v2551_v16, %v2249_v19  ;;  %v2604_v62 = vld [vmem:[%s3979_s3 + $0xac] sm:$0xf]  ;;  %v2465_v0 = vld [vmem:[%s3979_s3 + $0xb8] sm:$0xf0] }
 0x25b   : > { %v2288_v7 = vor.u32 %v2562_v59, %v2287_v58  ;;  %v2479_v58 = vld [vmem:[%s3979_s3 + $0xc8] sm:$0xf]  ;;  %v2610_v59 = vld [vmem:[%s3979_s3 + $0xd4] sm:$0xf0]  ;;  %v2439_v1 = vld [vmem:[%s3979_s3 + $0x80] sm:$0xf] }
 0x25c   : > { %1273 = vmatpush.bf16.msra.mxu1 %v2300_v13 }
 0x25d   : > { %v2687_v4 = vpop.eup %2686  ;;  %1300 = vmatpush.bf16.msra.mxu3 %v2292_v24  ;;  %v2455_v24 = vld [vmem:[%s3979_s3 + $0xa0] sm:$0xf] }
 0x25e   : > { %v945_v8 = vmul.f32 %v2687_v4, %v939_v31  ;;  %1258 = vmatpush.bf16.msra.mxu0 %v2328_v43  ;;  %v2566_v4 = vld [vmem:[%s3978_s2 + $0x74] sm:$0xf0] }
 0x25f   : > { %v2304_v17 = vor.u32 %v2566_v4, %v2303_v54  ;;  %v2489_v4 = vld [vmem:[%s3979_s3 + $0xf0] sm:$0xf0] }
 0x260   : > { %946 = vst [vmem:[#allocation6 + $0x4] sm:$0x3] %v945_v8  ;;  %v947_v9 = vpack.c.bf16 %v945_v8, %v945_v8  ;;  %1274 = vmatpush.bf16.msra.mxu1 %v2284_v6 }
 0x261   : > { %1286 = vmatpush.bf16.msra.mxu2 %v2304_v17  ;;  %1301 = vmatpush.bf16.msra.mxu3 %v2276_v12  ;;  %v2612_v17 = vld [vmem:[%s3979_s3 + $0xec] sm:$0xf]  ;;  %v2599_v12 = vld [vmem:[%s3979_s3 + $0x84] sm:$0xf] }
 0x262   : > { %956 = vmatmul.bf16.vlgmr.msrb.gmra.mxu0 %v947_v9  ;;  %969 = vmatmul.bf16.vlgmr.msrb.gmra.mxu1 %v947_v9 }
 0x263   : > { %982 = vmatmul.bf16.vlgmr.msrb.gmra.mxu2 %v947_v9  ;;  %995 = vmatmul.bf16.vlgmr.msrb.gmra.mxu3 %v947_v9 }
 0x264   : > { %1259 = vmatpush.bf16.msra.mxu0 %v2312_v5  ;;  %v2247_v5 = vld [vmem:[%s3978_s2] sm:$0xf]  ;;  %1275 = vmatpush.bf16.msra.mxu1 %v2268_v61 }
 0x265   : > { %1287 = vmatpush.bf16.msra.mxu2 %v2288_v7  ;;  %v2248_v14 = vor.u32 %v2553_v11, %v2247_v5  ;;  %1302 = vmatpush.bf16.msra.mxu3 %v2260_v33  ;;  %v3525_v7 = vor.u32 %v2610_v59, %v2479_v58  ;;  %v3589_v5 = vor.u32 %v2604_v62, %v2465_v0  ;;  %v2601_v11 = vld [vmem:[%s3979_s3 + $0x8c] sm:$0xf0]  ;;  %v2602_v33 = vld [vmem:[%s3979_s3 + $0x94] sm:$0xf0]  ;;  %v2409_v62 = vld [vmem:[%s3979_s3 + $0x50] sm:$0xf0] }
 0x268   : > { %1260 = vmatpush.bf16.msra.mxu0 %v2296_v52  ;;  %v2611_v52 = vld [vmem:[%s3979_s3 + $0xe4] sm:$0xf]  ;;  %1276 = vmatpush.bf16.msra.mxu1 %v2252_v21  ;;  %v2441_v21 = vld [vmem:[%s3979_s3 + $0x90] sm:$0xf0] }
 0x269   : > { %1288 = vmatpush.bf16.msra.mxu2 %v2272_v2 }
 0x26c   : > { %1261 = vmatpush.bf16.msra.mxu0 %v2280_v51 }
 0x270   : > { %1262 = vmatpush.bf16.msra.mxu0 %v2264_v56  ;;  %v2606_v56 = vld [vmem:[%s3979_s3 + $0xb4] sm:$0xf0] }
 0x274   : > { %1263 = vmatpush.bf16.msra.mxu0 %v2248_v14 }
 0x2df   : > { %v957_v49 = vpop.f32.mrf.mxu0  ;;  %v970_v55 = vpop.f32.mrf.mxu1 }
 0x2e0   : > { %v1004_v23 = vrot.slane %v970_v55, 6 }
 0x2e2   : > { %v1007_v34 = vsel %vm596_vm0, %v957_v49, %v1004_v23  ;;  %v2554_v23 = vld [vmem:[%s3978_s2 + $0x14] sm:$0xf0] }
 0x2e3   : > { %v2256_v38 = vor.u32 %v2554_v23, %v2255_v20  ;;  %v3602_v20 = vor.u32 %v2601_v11, %v2439_v1  ;;  %v2447_v23 = vld [vmem:[%s3979_s3 + $0x88] sm:$0xf]  ;;  %v2594_v11 = vld [vmem:[%s3979_s3 + $0x54] sm:$0xf0] }
 0x2e5   : > { %1289 = vmatpush.bf16.msra.mxu2 %v2256_v38  ;;  %v3616_v38 = vor.u32 %v2599_v12, %v2441_v21  ;;  %v2592_v12 = vld [vmem:[%s3979_s3 + $0x4c] sm:$0xf]  ;;  %v2417_v21 = vld [vmem:[%s3979_s3 + $0x58] sm:$0xf0] }
 0x2e6   : > { %v983_v50 = vpop.f32.mrf.mxu2  ;;  %v996_v40 = vpop.f32.mrf.mxu3 }
 0x2e7   : > { %v1005_v31 = vrot.slane %v983_v50, 4  ;;  %v1006_v8 = vrot.slane %v996_v40, 2  ;;  %v959_v9 = vpop.f32.mrf.mxu0  ;;  %v972_v42 = vpop.f32.mrf.mxu1  ;;  %v2487_v50 = vld [vmem:[%s3979_s3 + $0xe0] sm:$0xf]  ;;  %v2613_v40 = vld [vmem:[%s3979_s3 + $0xec] sm:$0xf0] }
 0x2e8   : > { %v3468_v54 = vor.u32 %v2613_v40, %v2487_v50  ;;  %v3481_v42 = vor.u32 %v2611_v52, %v2489_v4  ;;  %v2600_v50 = vld [vmem:[%s3979_s3 + $0x8c] sm:$0xf]  ;;  %v2449_v40 = vld [vmem:[%s3979_s3 + $0x98] sm:$0xf0]  ;;  %v3633_v4 = vor.u32 %v2602_v33, %v2447_v23  ;;  %v2391_v23 = vld [vmem:[%s3979_s3 + $0x20] sm:$0xf] }
 0x2e9   : > { %v1008_v35 = vsel %vm598_vm1, %v1005_v31, %v1006_v8  ;;  %v2495_v31 = vld [vmem:[%s3979_s3 + $0xe8] sm:$0xf]  ;;  %v2614_v8 = vld [vmem:[%s3979_s3 + $0xf4] sm:$0xf0]  ;;  %v2587_v33 = vld [vmem:[%s3979_s3 + $0x24] sm:$0xf] }
 0x2ea   : > { %v1009_v47 = vsel %vm600_vm2, %v1007_v34, %v1008_v35  ;;  %v3483_v13 = vor.u32 %v2614_v8, %v2495_v31  ;;  %1471 = vmatpush.bf16.msrb.mxu0 %v3468_v54  ;;  %v2609_v34 = vld [vmem:[%s3979_s3 + $0xcc] sm:$0xf0]  ;;  %v2607_v35 = vld [vmem:[%s3979_s3 + $0xc4] sm:$0xf]  ;;  %1484 = vmatpush.bf16.msrb.mxu1 %v3481_v42  ;;  %v2423_v31 = vld [vmem:[%s3979_s3 + $0x60] sm:$0xf] }
 0x2eb   : > { %v3400_v63 = vadd.f32 %v1009_v47, %v373_v26  ;;  %v3492_v26 = vor.u32 %v2612_v17, %v2497_v18  ;;  %v3514_v51 = vor.u32 %v2609_v34, %v2471_v30  ;;  %v3516_v57 = vor.u32 %v2607_v35, %v2473_v45  ;;  %v2597_v8 = vld [vmem:[%s3979_s3 + $0x6c] sm:$0xf0]  ;;  %v2595_v35 = vld [vmem:[%s3979_s3 + $0x64] sm:$0xf] }
 0x2ec   : > { %1497 = vmatpush.bf16.msrb.mxu2 %v3483_v13  ;;  %v3654_v30 = vor.u32 %v2600_v50, %v2449_v40  ;;  %v3656_v34 = vor.u32 %v2597_v8, %v2423_v31  ;;  %v2393_v50 = vld [vmem:[%s3979_s3 + $0x30] sm:$0xf0]  ;;  %v2399_v40 = vld [vmem:[%s3979_s3 + $0x28] sm:$0xf]  ;;  %v2590_v31 = vld [vmem:[%s3979_s3 + $0x34] sm:$0xf0] }
 0x2ed   : > { %v2242_v25 = vmul.f32 -1.442695, %v3400_v63  ;;  %v1032_v27 = vrot.slane %v3400_v63, 2  ;;  %v1056_v32 = vrot.slane %v3400_v63, 6  ;;  %1510 = vmatpush.bf16.msrb.mxu3 %v3492_v26  ;;  %v2588_v8 = vld [vmem:[%s3979_s3 + $0x2c] sm:$0xf] }
 0x2ee   : > { %v985_v41 = vpop.f32.mrf.mxu2  ;;  %v998_v43 = vpop.f32.mrf.mxu3  ;;  %1472 = vmatpush.bf16.msrb.mxu0 %v3514_v51  ;;  %1485 = vmatpush.bf16.msrb.mxu1 %v3516_v57  ;;  %v2583_v45 = vld [vmem:[%s3979_s3 + $0x4] sm:$0xf] }
 0x2ef   : > { %2688 = vpow2.f32 %v2242_v25  ;;  %v2243_v49 = vmul.f32 -1.442695, %v1032_v27  ;;  %v2244_v55 = vmul.f32 -1.442695, %v1056_v32  ;;  %v1053_v27 = vrot.slane %v3400_v63, 4 }
 0x2f0   : > { %v2605_v32 = vld [vmem:[%s3979_s3 + $0xac] sm:$0xf0]  ;;  %1498 = vmatpush.bf16.msrb.mxu2 %v3525_v7  ;;  %v3546_v41 = vor.u32 %v2608_v10, %v2481_v15  ;;  %v2457_v63 = vld [vmem:[%s3979_s3 + $0xb0] sm:$0xf0]  ;;  %v2431_v10 = vld [vmem:[%s3979_s3 + $0x68] sm:$0xf] }
 0x2f1   : > { %2690 = vpow2.f32 %v2243_v49  ;;  %v3548_v43 = vor.u32 %v2605_v32, %v2455_v24  ;;  %v3560_v49 = vor.u32 %v2603_v44, %v2457_v63  ;;  %v2598_v15 = vld [vmem:[%s3979_s3 + $0x74] sm:$0xf0]  ;;  %v2433_v32 = vld [vmem:[%s3979_s3 + $0x78] sm:$0xf0]  ;;  %v2407_v44 = vld [vmem:[%s3979_s3 + $0x40] sm:$0xf] }
 0x2f2   : > { %2692 = vpow2.f32 %v2244_v55  ;;  %v2463_v55 = vld [vmem:[%s3979_s3 + $0xa8] sm:$0xf]  ;;  %1511 = vmatpush.bf16.msrb.mxu3 %v3546_v41 }
 0x2f3   : > { %1473 = vmatpush.bf16.msrb.mxu0 %v3548_v43  ;;  %v3572_v61 = vor.u32 %v2606_v56, %v2463_v55  ;;  %1486 = vmatpush.bf16.msrb.mxu1 %v3560_v49  ;;  %v2593_v56 = vld [vmem:[%s3979_s3 + $0x4c] sm:$0xf0] }
 0x2f4   : > { %v3712_v0 = vor.u32 %v2593_v56, %v2407_v44  ;;  %v2385_v56 = vld [vmem:[%s3979_s3 + $0x18] sm:$0xf0] }
 0x2f5   : > { %v2689_v53 = vpop.eup %2688  ;;  %1499 = vmatpush.bf16.msrb.mxu2 %v3572_v61 }
 0x2f6   : > { %v3479_v9 = vadd.f32 1.0, %v2689_v53  ;;  %1512 = vmatpush.bf16.msrb.mxu3 %v3589_v5 }
 0x2f7   : > { %v2691_v22 = vpop.eup %2690  ;;  %1474 = vmatpush.bf16.msrb.mxu0 %v3602_v20  ;;  %1487 = vmatpush.bf16.msrb.mxu1 %v3616_v38 }
 0x2f8   : > { %v2693_v39 = vpop.eup %2692  ;;  %2694 = vrcp.f32 %v3479_v9  ;;  %v3508_v46 = vadd.f32 1.0, %v2691_v22  ;;  %v1027_v6 = vand.u32 2147483648, %v3479_v9  ;;  %v1025_v25 = vand.u32 2147483647, %v3479_v9 }
 0x2f9   : > { %v3510_v47 = vadd.f32 1.0, %v2693_v39  ;;  %vm1021_vm2 = vweird.f32 %v3479_v9  ;;  %1500 = vmatpush.bf16.msrb.mxu2 %v3633_v4  ;;  %v3769_v22 = vor.u32 %v2587_v33, %v2393_v50 }
 0x2fa   : > { %2696 = vrcp.f32 %v3508_v46  ;;  %v3558_v36 = vor.u32 1.1754944e-38, %v1027_v6  ;;  %vm3583_vm0 = vcmp.eq.f32.partialorder %v1025_v25, 8.507059e+37  ;;  %v1047_v3 = vand.u32 2147483647, %v3508_v46  ;;  %1513 = vmatpush.bf16.msrb.mxu3 %v3654_v30 }
 0x2fb   : > { %2698 = vrcp.f32 %v3510_v47  ;;  %v1049_v19 = vand.u32 2147483648, %v3508_v46  ;;  %vm1043_vm14 = vweird.f32 %v3508_v46  ;;  %v3683_v25 = vor.u32 %v2598_v15, %v2431_v10  ;;  %1475 = vmatpush.bf16.msrb.mxu0 %v3656_v34  ;;  %v2383_v15 = vld [vmem:[%s3979_s3 + $0x8] sm:$0xf] }
 0x2fc   : > { %2700 = vtanh.f32 %v1053_v27  ;;  %vm3649_vm3 = vcmp.eq.f32.partialorder %v1047_v3, 8.507059e+37  ;;  %v2596_v27 = vld [vmem:[%s3979_s3 + $0x6c] sm:$0xf]  ;;  %v2415_v3 = vld [vmem:[%s3979_s3 + $0x48] sm:$0xf]  ;;  %vm1067_vm6 = vweird.f32 %v3510_v47 }
 0x2fd   : > { %v1050_v58 = vor.u32 1.1754944e-38, %v1049_v19  ;;  %v3699_v55 = vor.u32 %v2596_v27, %v2433_v32  ;;  %1501 = vmatpush.bf16.msrb.mxu2 %v3683_v25  ;;  %v3729_v19 = vor.u32 %v2594_v11, %v2415_v3 }
 0x2fe   : > { %v3556_v48 = vpop.eup %2694 }
 0x2ff   : > { %v1017_v60 = vmul.f32 %v3556_v48, %v3479_v9  ;;  %vm1022_vm1 = vweird.f32 %v3556_v48  ;;  %v2425_v9 = vld [vmem:[%s3979_s3 + $0x70] sm:$0xf0]  ;;  %1514 = vmatpush.bf16.msrb.mxu3 %v3699_v55  ;;  %1476 = vmatpush.bf16.msrb.mxu0 %v3712_v0 }
 0x300   : > { %v3597_v14 = vpop.eup %2696  ;;  %vm3645_vm15 = vmor %vm1021_vm2, %vm1022_vm1  ;;  %v3674_v6 = vor.u32 %v2595_v35, %v2425_v9  ;;  %v2401_v35 = vld [vmem:[%s3979_s3 + $0x38] sm:$0xf0]  ;;  %v2375_v9 = vld [vmem:[%s3979_s3] sm:$0xf] }
 0x301   : > { %v1018_v16 = vsub.f32 1.0, %v1017_v60  ;;  %v3610_v28 = vpop.eup %2698  ;;  %v1039_v29 = vmul.f32 %v3597_v14, %v3508_v46  ;;  %vm1044_vm13 = vweird.f32 %v3597_v14  ;;  %v2591_v60 = vld [vmem:[%s3979_s3 + $0x44] sm:$0xf]  ;;  %1502 = vmatpush.bf16.msrb.mxu2 %v3729_v19  ;;  %v3800_v27 = vor.u32 %v2588_v8, %v2401_v35 }
 0x302   : > { %v1063_v53 = vmul.f32 %v3610_v28, %v3510_v47  ;;  %vm3669_vm4 = vmor %vm1043_vm14, %vm1044_vm13  ;;  %v2701_v24 = vpop.eup %2700  ;;  %1488 = vmatpush.bf16.msrb.mxu1 %v3674_v6  ;;  %v3714_v1 = vor.u32 %v2591_v60, %v2409_v62  ;;  %vm1068_vm5 = vweird.f32 %v3610_v28  ;;  %v1071_v60 = vand.u32 2147483647, %v3510_v47 }
 0x303   : > { %v1019_v52 = vmul.f32 %v3556_v48, %v1018_v16  ;;  %v1040_v18 = vsub.f32 1.0, %v1039_v29  ;;  %v2589_v29 = vld [vmem:[%s3979_s3 + $0x2c] sm:$0xf0]  ;;  %vm1069_vm7 = vmor %vm1067_vm6, %vm1068_vm5 }
 0x304   : > { %v1064_v59 = vsub.f32 1.0, %v1063_v53  ;;  %v3759_v53 = vor.u32 %v2589_v29, %v2391_v23  ;;  %vm1072_vm8 = vcmp.eq.f32.partialorder %v1071_v60, 8.507059e+37  ;;  %v1308_v23 = vld [vmem:[#allocation4] sm:$0x3] }
 0x305   : > { %v1020_v39 = vadd.f32 %v3556_v48, %v1019_v52  ;;  %v1041_v46 = vmul.f32 %v3597_v14, %v1040_v18  ;;  %v1310_v29 = vpack.c.bf16 %v1308_v23, %v1308_v23 }
 0x306   : > { %v1065_v2 = vmul.f32 %v3610_v28, %v1064_v59  ;;  %1489 = vmatpush.bf16.msrb.mxu1 %v3714_v1  ;;  %v1073_v59 = vand.u32 2147483648, %v3510_v47  ;;  %1477 = vmatpush.bf16.msrb.mxu0 %v3759_v53 }
 0x307   : > { %v1024_v63 = vsel %vm3645_vm15, %v3556_v48, %v1020_v39  ;;  %v1042_v48 = vadd.f32 %v3597_v14, %v1041_v46  ;;  %v2585_v39 = vld [vmem:[%s3979_s3 + $0xc] sm:$0xf0] }
 0x308   : > { %v1029_v16 = vsel %vm3583_vm0, %v3558_v36, %v1024_v63  ;;  %v1066_v46 = vadd.f32 %v3610_v28, %v1065_v2  ;;  %v3802_v32 = vor.u32 %v2585_v39, %v2375_v9  ;;  %v2584_v63 = vld [vmem:[%s3979_s3 + $0xc] sm:$0xf]  ;;  %v1074_v11 = vor.u32 1.1754944e-38, %v1073_v59 }
 0x309   : > { %v1046_v36 = vsel %vm3669_vm4, %v3597_v14, %v1042_v48  ;;  %v3757_v14 = vor.u32 %v2592_v12, %v2417_v21  ;;  %v1078_v18 = vmul.f32 %v2701_v24, %v1029_v16  ;;  %v2586_v24 = vld [vmem:[%s3979_s3 + $0x14] sm:$0xf0]  ;;  %v3823_v3 = vor.u32 %v2584_v63, %v2385_v56 }
 0x30a   : > { %v1051_v52 = vsel %vm3649_vm3, %v1050_v58, %v1046_v36  ;;  %v2377_v58 = vld [vmem:[%s3979_s3 + $0x10] sm:$0xf0]  ;;  %1490 = vmatpush.bf16.msrb.mxu1 %v3769_v22  ;;  %v3816_v62 = vor.u32 %v2586_v24, %v2383_v15  ;;  %v1070_v48 = vsel %vm1069_vm7, %v3610_v28, %v1066_v46  ;;  %1478 = vmatpush.bf16.msrb.mxu0 %v3802_v32 }
 0x30b   : > { %v1077_v17 = vmul.f32 %v1051_v52, %v3255_v37  ;;  %v3781_v37 = vor.u32 %v2590_v31, %v2399_v40  ;;  %1515 = vmatpush.bf16.msrb.mxu3 %v3757_v14  ;;  %v3805_v44 = vor.u32 %v2583_v45, %v2377_v58  ;;  %v1075_v12 = vsel %vm1072_vm8, %v1074_v11, %v1070_v48  ;;  %v369_v40 = vld [vmem:[%s3980_s4] sm:$0xf] }
 0x30c   : > { %v1088_v8 = vperm.slane %v369_v40, 0  ;;  %v1091_v15 = vperm.slane %v369_v40, 3 }
 0x30d   : > { %v1079_v10 = vadd.f32 %v1078_v18, %v1077_v17  ;;  %1503 = vmatpush.bf16.msrb.mxu2 %v3781_v37  ;;  %v1089_v17 = vperm.slane %v369_v40, 1 }
 0x30e   : > { %1491 = vmatpush.bf16.msrb.mxu1 %v3805_v44 }
 0x30f   : > { %2702 = vtanh.f32 %v1079_v10  ;;  %1084 = vst [vmem:[#allocation3] sm:$0x3] %v1079_v10  ;;  %1516 = vmatpush.bf16.msrb.mxu3 %v3800_v27 }
 0x311   : > { %1504 = vmatpush.bf16.msrb.mxu2 %v3816_v62 }
 0x313   : > { %1517 = vmatpush.bf16.msrb.mxu3 %v3823_v3 }
 0x315   : > { %v2703_v47 = vpop.eup %2702 }
 0x316   : > { %v1081_v16 = vmul.f32 %v2703_v47, %v1075_v12 }
 0x318   : > { %1082 = vst [vmem:[#allocation6 + $0x6] sm:$0x3] %v1081_v16 }
 0x319   : > { %1083 = vst [vmem:[#allocation2] sm:$0x3] %v1081_v16 }
 0x31f   : > { %v1085_v28 = vld [vmem:[#allocation6] sm:$0xff] }
 0x320   : > { %v1086_v21 = vpack.c.bf16 %v1085_v28, %v1085_v28 }
 0x322   : > { %1264 = vmatmul.bf16.vlgmr.msra.gmra.mxu0 %v1086_v21  ;;  %1277 = vmatmul.bf16.vlgmr.msra.gmra.mxu1 %v1086_v21 }
 0x323   : > { %1290 = vmatmul.bf16.vlgmr.msra.gmra.mxu2 %v1086_v21  ;;  %1303 = vmatmul.bf16.vlgmr.msra.gmra.mxu3 %v1086_v21 }
 0x324   : > { %1592 = vmatpush.bf16.msra.mxu0 %v3468_v54  ;;  %1605 = vmatpush.bf16.msra.mxu1 %v3481_v42 }
 0x325   : > { %1618 = vmatpush.bf16.msra.mxu2 %v3483_v13  ;;  %1631 = vmatpush.bf16.msra.mxu3 %v3492_v26 }
 0x328   : > { %1593 = vmatpush.bf16.msra.mxu0 %v3514_v51  ;;  %1606 = vmatpush.bf16.msra.mxu1 %v3516_v57 }
 0x329   : > { %1619 = vmatpush.bf16.msra.mxu2 %v3525_v7  ;;  %1632 = vmatpush.bf16.msra.mxu3 %v3546_v41 }
 0x32c   : > { %1594 = vmatpush.bf16.msra.mxu0 %v3548_v43  ;;  %1607 = vmatpush.bf16.msra.mxu1 %v3560_v49 }
 0x32d   : > { %1620 = vmatpush.bf16.msra.mxu2 %v3572_v61  ;;  %1633 = vmatpush.bf16.msra.mxu3 %v3589_v5 }
 0x330   : > { %1595 = vmatpush.bf16.msra.mxu0 %v3602_v20  ;;  %1608 = vmatpush.bf16.msra.mxu1 %v3616_v38 }
 0x331   : > { %1621 = vmatpush.bf16.msra.mxu2 %v3633_v4  ;;  %1634 = vmatpush.bf16.msra.mxu3 %v3654_v30 }
 0x332   : > { %1479 = vmatmul.bf16.vlgmr.msrb.gmra.mxu0 %v1310_v29  ;;  %1492 = vmatmul.bf16.vlgmr.msrb.gmra.mxu1 %v1310_v29 }
 0x333   : > { %1505 = vmatmul.bf16.vlgmr.msrb.gmra.mxu2 %v1310_v29  ;;  %1518 = vmatmul.bf16.vlgmr.msrb.gmra.mxu3 %v1310_v29  ;;  %v1090_v29 = vperm.slane %v369_v40, 2 }
 0x334   : > { %1596 = vmatpush.bf16.msra.mxu0 %v3656_v34  ;;  %1609 = vmatpush.bf16.msra.mxu1 %v3674_v6 }
 0x335   : > { %1622 = vmatpush.bf16.msra.mxu2 %v3683_v25  ;;  %1635 = vmatpush.bf16.msra.mxu3 %v3699_v55 }
 0x338   : > { %1597 = vmatpush.bf16.msra.mxu0 %v3712_v0  ;;  %1610 = vmatpush.bf16.msra.mxu1 %v3714_v1 }
 0x339   : > { %1623 = vmatpush.bf16.msra.mxu2 %v3729_v19  ;;  %1636 = vmatpush.bf16.msra.mxu3 %v3757_v14 }
 0x33c   : > { %1598 = vmatpush.bf16.msra.mxu0 %v3759_v53  ;;  %1611 = vmatpush.bf16.msra.mxu1 %v3769_v22 }
 0x33d   : > { %1624 = vmatpush.bf16.msra.mxu2 %v3781_v37  ;;  %1637 = vmatpush.bf16.msra.mxu3 %v3800_v27 }
 0x340   : > { %1599 = vmatpush.bf16.msra.mxu0 %v3802_v32  ;;  %1612 = vmatpush.bf16.msra.mxu1 %v3805_v44 }
 0x341   : > { %1625 = vmatpush.bf16.msra.mxu2 %v3816_v62  ;;  %1638 = vmatpush.bf16.msra.mxu3 %v3823_v3 }
 0x344   : > { %1732 = vmatpush.bf16.msrb.mxu0 %v3468_v54  ;;  %1745 = vmatpush.bf16.msrb.mxu1 %v3481_v42 }
 0x345   : > { %1758 = vmatpush.bf16.msrb.mxu2 %v3483_v13  ;;  %1771 = vmatpush.bf16.msrb.mxu3 %v3492_v26 }
 0x348   : > { %1733 = vmatpush.bf16.msrb.mxu0 %v3514_v51  ;;  %1746 = vmatpush.bf16.msrb.mxu1 %v3516_v57 }
 0x349   : > { %1759 = vmatpush.bf16.msrb.mxu2 %v3525_v7  ;;  %1772 = vmatpush.bf16.msrb.mxu3 %v3546_v41 }
 0x34c   : > { %1734 = vmatpush.bf16.msrb.mxu0 %v3548_v43  ;;  %1747 = vmatpush.bf16.msrb.mxu1 %v3560_v49 }
 0x34d   : > { %1760 = vmatpush.bf16.msrb.mxu2 %v3572_v61  ;;  %1773 = vmatpush.bf16.msrb.mxu3 %v3589_v5 }
 0x350   : > { %1735 = vmatpush.bf16.msrb.mxu0 %v3602_v20  ;;  %1748 = vmatpush.bf16.msrb.mxu1 %v3616_v38 }
 0x351   : > { %1761 = vmatpush.bf16.msrb.mxu2 %v3633_v4  ;;  %1774 = vmatpush.bf16.msrb.mxu3 %v3654_v30 }
 0x354   : > { %1736 = vmatpush.bf16.msrb.mxu0 %v3656_v34  ;;  %1749 = vmatpush.bf16.msrb.mxu1 %v3674_v6 }
 0x355   : > { %1762 = vmatpush.bf16.msrb.mxu2 %v3683_v25  ;;  %1775 = vmatpush.bf16.msrb.mxu3 %v3699_v55 }
 0x358   : > { %1737 = vmatpush.bf16.msrb.mxu0 %v3712_v0  ;;  %1750 = vmatpush.bf16.msrb.mxu1 %v3714_v1 }
 0x359   : > { %1763 = vmatpush.bf16.msrb.mxu2 %v3729_v19  ;;  %1776 = vmatpush.bf16.msrb.mxu3 %v3757_v14 }
 0x35c   : > { %1738 = vmatpush.bf16.msrb.mxu0 %v3759_v53  ;;  %1751 = vmatpush.bf16.msrb.mxu1 %v3769_v22 }
 0x35d   : > { %1764 = vmatpush.bf16.msrb.mxu2 %v3781_v37  ;;  %1777 = vmatpush.bf16.msrb.mxu3 %v3800_v27 }
 0x360   : > { %1739 = vmatpush.bf16.msrb.mxu0 %v3802_v32  ;;  %1752 = vmatpush.bf16.msrb.mxu1 %v3805_v44 }
 0x361   : > { %1765 = vmatpush.bf16.msrb.mxu2 %v3816_v62  ;;  %1778 = vmatpush.bf16.msrb.mxu3 %v3823_v3 }
 0x39f   : > { %v1265_v36 = vpop.f32.mrf.mxu0  ;;  %v1278_v2 = vpop.f32.mrf.mxu1 }
 0x3a0   : > { %v3895_v18 = vadd.f32 %v1265_v36, %v1088_v8  ;;  %v3897_v35 = vadd.f32 %v1278_v2, %v1089_v17 }
 0x3a6   : > { %v1291_v33 = vpop.f32.mrf.mxu2  ;;  %v1304_v50 = vpop.f32.mrf.mxu3 }
 0x3a7   : > { %v1267_v52 = vpop.f32.mrf.mxu0  ;;  %v1280_v31 = vpop.f32.mrf.mxu1  ;;  %v3901_v63 = vadd.f32 %v1304_v50, %v1091_v15 }
 0x3a8   : > { %v3904_v52 = vadd.f32 %v1291_v33, %v1090_v29 }
 0x3ae   : > { %v1293_v9 = vpop.f32.mrf.mxu2  ;;  %v1306_v39 = vpop.f32.mrf.mxu3 }
 0x3af   : > { %v1480_v45 = vpop.f32.mrf.mxu0  ;;  %v1493_v58 = vpop.f32.mrf.mxu1 }
 0x3b0   : > { %v1523_v59 = vadd.f32 %v1480_v45, %v3895_v18  ;;  %v1524_v10 = vadd.f32 %v1493_v58, %v3897_v35 }
 0x3b2   : > { %v2501_v24 = vmul.f32 -1.442695, %v1523_v59  ;;  %v2502_v46 = vmul.f32 -1.442695, %v1524_v10 }
 0x3b4   : > { %2704 = vpow2.f32 %v2501_v24 }
 0x3b5   : > { %2706 = vpow2.f32 %v2502_v46 }
 0x3b6   : > { %v1506_v56 = vpop.f32.mrf.mxu2  ;;  %v1519_v60 = vpop.f32.mrf.mxu3 }
 0x3b7   : > { %v1526_v48 = vadd.f32 %v1519_v60, %v3901_v63  ;;  %v1482_v11 = vpop.f32.mrf.mxu0  ;;  %v1495_v47 = vpop.f32.mrf.mxu1  ;;  %v1525_v17 = vadd.f32 %v1506_v56, %v3904_v52 }
 0x3b9   : > { %v2503_v12 = vmul.f32 -1.442695, %v1526_v48 }
 0x3ba   : > { %v2705_v16 = vpop.eup %2704 }
 0x3bb   : > { %v2707_v28 = vpop.eup %2706  ;;  %v1530_v21 = vadd.f32 1.0, %v2705_v16  ;;  %2708 = vpow2.f32 %v2503_v12  ;;  %v1309_v16 = vld [vmem:[#allocation5] sm:$0x3] }
 0x3bc   : > { %v1549_v23 = vadd.f32 1.0, %v2707_v28 }
 0x3bd   : > { %2710 = vrcp.f32 %v1530_v21  ;;  %v1542_v10 = vand.u32 2147483648, %v1530_v21  ;;  %v1540_v24 = vand.u32 2147483647, %v1530_v21  ;;  %vm1536_vm11 = vweird.f32 %v1530_v21 }
 0x3be   : > { %2712 = vrcp.f32 %v1549_v23  ;;  %v1521_v36 = vpop.f32.mrf.mxu3  ;;  %v1508_v2 = vpop.f32.mrf.mxu2  ;;  %v1561_v40 = vand.u32 2147483648, %v1549_v23  ;;  %v1559_v33 = vand.u32 2147483647, %v1549_v23  ;;  %vm1555_vm12 = vweird.f32 %v1549_v23 }
 0x3bf   : > { %v1543_v56 = vor.u32 1.1754944e-38, %v1542_v10  ;;  %vm1541_vm2 = vcmp.eq.f32.partialorder %v1540_v24, 8.507059e+37 }
 0x3c0   : > { %v1562_v12 = vor.u32 1.1754944e-38, %v1561_v40  ;;  %vm1560_vm13 = vcmp.eq.f32.partialorder %v1559_v33, 8.507059e+37 }
 0x3c1   : > { %v2709_v50 = vpop.eup %2708 }
 0x3c2   : > { %v1569_v31 = vadd.f32 1.0, %v2709_v50 }
 0x3c3   : > { %v2711_v8 = vpop.eup %2710 }
 0x3c4   : > { %v2713_v9 = vpop.eup %2712  ;;  %v1532_v39 = vmul.f32 %v2711_v8, %v1530_v21  ;;  %2714 = vrcp.f32 %v1569_v31  ;;  %vm1537_vm9 = vweird.f32 %v2711_v8  ;;  %vm1575_vm15 = vweird.f32 %v1569_v31 }
 0x3c5   : > { %v1551_v45 = vmul.f32 %v2713_v9, %v1549_v23  ;;  %2716 = vtanh.f32 %v1525_v17  ;;  %vm1556_vm10 = vweird.f32 %v2713_v9  ;;  %vm1538_vm0 = vmor %vm1536_vm11, %vm1537_vm9 }
 0x3c6   : > { %v1533_v58 = vsub.f32 1.0, %v1532_v39  ;;  %vm1557_vm1 = vmor %vm1555_vm12, %vm1556_vm10 }
 0x3c7   : > { %v1552_v59 = vsub.f32 1.0, %v1551_v45 }
 0x3c8   : > { %v1534_v15 = vmul.f32 %v2711_v8, %v1533_v58 }
 0x3c9   : > { %v1553_v46 = vmul.f32 %v2713_v9, %v1552_v59  ;;  %v1581_v59 = vand.u32 2147483648, %v1569_v31 }
 0x3ca   : > { %v2715_v60 = vpop.eup %2714  ;;  %v1535_v48 = vadd.f32 %v2711_v8, %v1534_v15 }
 0x3cb   : > { %v1554_v11 = vadd.f32 %v2713_v9, %v1553_v46  ;;  %v1571_v47 = vmul.f32 %v2715_v60, %v1569_v31  ;;  %v2717_v29 = vpop.eup %2716  ;;  %vm1576_vm14 = vweird.f32 %v2715_v60  ;;  %v1582_v40 = vor.u32 1.1754944e-38, %v1581_v59 }
 0x3cc   : > { %v1539_v28 = vsel %vm1538_vm0, %v2711_v8, %v1535_v48  ;;  %v1579_v8 = vand.u32 2147483647, %v1569_v31  ;;  %vm1577_vm3 = vmor %vm1575_vm15, %vm1576_vm14 }
 0x3cd   : > { %v1544_v36 = vsel %vm1541_vm2, %v1543_v56, %v1539_v28  ;;  %v1558_v2 = vsel %vm1557_vm1, %v2713_v9, %v1554_v11  ;;  %v1572_v50 = vsub.f32 1.0, %v1571_v47 }
 0x3ce   : > { %v1563_v17 = vsel %vm1560_vm13, %v1562_v12, %v1558_v2  ;;  %v1586_v39 = vmul.f32 %v2717_v29, %v1544_v36  ;;  %vm1580_vm4 = vcmp.eq.f32.partialorder %v1579_v8, 8.507059e+37 }
 0x3cf   : > { %v1585_v45 = vmul.f32 %v1563_v17, %v1309_v16  ;;  %v1573_v21 = vmul.f32 %v2715_v60, %v1572_v50 }
 0x3d1   : > { %v3907_v23 = vadd.f32 %v1586_v39, %v1585_v45  ;;  %v1574_v58 = vadd.f32 %v2715_v60, %v1573_v21 }
 0x3d3   : > { %2718 = vtanh.f32 %v3907_v23  ;;  %v1578_v10 = vsel %vm1577_vm3, %v2715_v60, %v1574_v58  ;;  %v1719_v29 = vrot.slane %v3907_v23, 6 }
 0x3d4   : > { %v1583_v15 = vsel %vm1580_vm4, %v1582_v40, %v1578_v10 }
 0x3d9   : > { %v2719_v9 = vpop.eup %2718 }
 0x3da   : > { %v1589_v24 = vmul.f32 %v2719_v9, %v1583_v15 }
 0x3dc   : > { %1590 = vst [vmem:[%s2849_s30] sm:$0x3] %v1589_v24  ;;  %v1591_v46 = vpack.c.bf16 %v1589_v24, %v1589_v24 }
 0x3de   : > { %1600 = vmatmul.bf16.vlgmr.msra.gmra.mxu0 %v1591_v46  ;;  %1613 = vmatmul.bf16.vlgmr.msra.gmra.mxu1 %v1591_v46 }
 0x3df   : > { %1626 = vmatmul.bf16.vlgmr.msra.gmra.mxu2 %v1591_v46  ;;  %1639 = vmatmul.bf16.vlgmr.msra.gmra.mxu3 %v1591_v46 }
 0x3e0   : > { %1872 = vmatpush.bf16.msra.mxu0 %v3468_v54  ;;  %1885 = vmatpush.bf16.msra.mxu1 %v3481_v42 }
 0x3e1   : > { %1898 = vmatpush.bf16.msra.mxu2 %v3483_v13  ;;  %1911 = vmatpush.bf16.msra.mxu3 %v3492_v26 }
 0x3e4   : > { %1873 = vmatpush.bf16.msra.mxu0 %v3514_v51  ;;  %1886 = vmatpush.bf16.msra.mxu1 %v3516_v57 }
 0x3e5   : > { %1899 = vmatpush.bf16.msra.mxu2 %v3525_v7  ;;  %1912 = vmatpush.bf16.msra.mxu3 %v3546_v41 }
 0x3e8   : > { %1874 = vmatpush.bf16.msra.mxu0 %v3548_v43  ;;  %1887 = vmatpush.bf16.msra.mxu1 %v3560_v49 }
 0x3e9   : > { %1900 = vmatpush.bf16.msra.mxu2 %v3572_v61  ;;  %1913 = vmatpush.bf16.msra.mxu3 %v3589_v5 }
 0x3ec   : > { %1875 = vmatpush.bf16.msra.mxu0 %v3602_v20  ;;  %1888 = vmatpush.bf16.msra.mxu1 %v3616_v38 }
 0x3ed   : > { %1901 = vmatpush.bf16.msra.mxu2 %v3633_v4  ;;  %1914 = vmatpush.bf16.msra.mxu3 %v3654_v30 }
 0x3f0   : > { %1876 = vmatpush.bf16.msra.mxu0 %v3656_v34  ;;  %1889 = vmatpush.bf16.msra.mxu1 %v3674_v6 }
 0x3f1   : > { %1902 = vmatpush.bf16.msra.mxu2 %v3683_v25  ;;  %1915 = vmatpush.bf16.msra.mxu3 %v3699_v55 }
 0x3f4   : > { %1877 = vmatpush.bf16.msra.mxu0 %v3712_v0  ;;  %1890 = vmatpush.bf16.msra.mxu1 %v3714_v1 }
 0x3f5   : > { %1903 = vmatpush.bf16.msra.mxu2 %v3729_v19  ;;  %1916 = vmatpush.bf16.msra.mxu3 %v3757_v14 }
 0x3f8   : > { %1878 = vmatpush.bf16.msra.mxu0 %v3759_v53  ;;  %1891 = vmatpush.bf16.msra.mxu1 %v3769_v22 }
 0x3f9   : > { %1904 = vmatpush.bf16.msra.mxu2 %v3781_v37  ;;  %1917 = vmatpush.bf16.msra.mxu3 %v3800_v27 }
 0x3fc   : > { %1879 = vmatpush.bf16.msra.mxu0 %v3802_v32  ;;  %1892 = vmatpush.bf16.msra.mxu1 %v3805_v44 }
 0x3fd   : > { %1905 = vmatpush.bf16.msra.mxu2 %v3816_v62  ;;  %1918 = vmatpush.bf16.msra.mxu3 %v3823_v3 }
 0x45b   : > { %v1601_v54 = vpop.f32.mrf.mxu0  ;;  %v1614_v42 = vpop.f32.mrf.mxu1 }
 0x45c   : > { %v1648_v13 = vrot.slane %v1601_v54, 6  ;;  %v1649_v26 = vrot.slane %v1614_v42, 6 }
 0x45e   : > { %v1656_v51 = vadd.f32 %v1648_v13, %v3895_v18  ;;  %v1657_v57 = vadd.f32 %v1649_v26, %v3897_v35 }
 0x460   : > { %v2504_v7 = vmul.f32 -1.442695, %v1656_v51  ;;  %v2505_v41 = vmul.f32 -1.442695, %v1657_v57 }
 0x462   : > { %2720 = vpow2.f32 %v2504_v7  ;;  %v1627_v43 = vpop.f32.mrf.mxu2  ;;  %v1640_v49 = vpop.f32.mrf.mxu3 }
 0x463   : > { %2722 = vpow2.f32 %v2505_v41  ;;  %v1651_v61 = vrot.slane %v1640_v49, 6  ;;  %v1603_v5 = vpop.f32.mrf.mxu0  ;;  %v1616_v20 = vpop.f32.mrf.mxu1  ;;  %v1650_v1 = vrot.slane %v1627_v43, 6 }
 0x465   : > { %v1659_v38 = vadd.f32 %v1651_v61, %v3901_v63  ;;  %v1658_v22 = vadd.f32 %v1650_v1, %v3904_v52 }
 0x467   : > { %v2506_v4 = vmul.f32 -1.442695, %v1659_v38 }
 0x468   : > { %v2721_v30 = vpop.eup %2720 }
 0x469   : > { %v2723_v34 = vpop.eup %2722  ;;  %v1663_v6 = vadd.f32 1.0, %v2721_v30  ;;  %2724 = vpow2.f32 %v2506_v4 }
 0x46a   : > { %v1682_v25 = vadd.f32 1.0, %v2723_v34  ;;  %v1629_v55 = vpop.f32.mrf.mxu2  ;;  %v1642_v0 = vpop.f32.mrf.mxu3 }
 0x46b   : > { %2726 = vrcp.f32 %v1663_v6  ;;  %v1675_v3 = vand.u32 2147483648, %v1663_v6  ;;  %v1673_v60 = vand.u32 2147483647, %v1663_v6  ;;  %vm1669_vm7 = vweird.f32 %v1663_v6 }
 0x46c   : > { %2728 = vrcp.f32 %v1682_v25  ;;  %v1694_v31 = vand.u32 2147483648, %v1682_v25  ;;  %v1692_v56 = vand.u32 2147483647, %v1682_v25  ;;  %vm1688_vm8 = vweird.f32 %v1682_v25 }
 0x46d   : > { %v1676_v12 = vor.u32 1.1754944e-38, %v1675_v3  ;;  %vm1674_vm11 = vcmp.eq.f32.partialorder %v1673_v60, 8.507059e+37 }
 0x46e   : > { %v1695_v36 = vor.u32 1.1754944e-38, %v1694_v31  ;;  %vm1693_vm12 = vcmp.eq.f32.partialorder %v1692_v56, 8.507059e+37 }
 0x46f   : > { %v2725_v19 = vpop.eup %2724 }
 0x470   : > { %v1702_v14 = vadd.f32 1.0, %v2725_v19 }
 0x471   : > { %v2727_v53 = vpop.eup %2726 }
 0x472   : > { %v2729_v37 = vpop.eup %2728  ;;  %v1665_v27 = vmul.f32 %v2727_v53, %v1663_v6  ;;  %2730 = vrcp.f32 %v1702_v14  ;;  %vm1670_vm5 = vweird.f32 %v2727_v53  ;;  %v1714_v23 = vand.u32 2147483648, %v1702_v14 }
 0x473   : > { %v1684_v32 = vmul.f32 %v2729_v37, %v1682_v25  ;;  %2732 = vtanh.f32 %v1658_v22  ;;  %vm1689_vm6 = vweird.f32 %v2729_v37  ;;  %vm1671_vm9 = vmor %vm1669_vm7, %vm1670_vm5  ;;  %vm1708_vm1 = vweird.f32 %v1702_v14 }
 0x474   : > { %v1666_v44 = vsub.f32 1.0, %v1665_v27  ;;  %vm1690_vm10 = vmor %vm1688_vm8, %vm1689_vm6  ;;  %v1712_v9 = vand.u32 2147483647, %v1702_v14  ;;  %v1715_v24 = vor.u32 1.1754944e-38, %v1714_v23 }
 0x475   : > { %v1685_v62 = vsub.f32 1.0, %v1684_v32 }
 0x476   : > { %v1667_v33 = vmul.f32 %v2727_v53, %v1666_v44  ;;  %vm1713_vm13 = vcmp.eq.f32.partialorder %v1712_v9, 8.507059e+37 }
 0x477   : > { %v1686_v48 = vmul.f32 %v2729_v37, %v1685_v62 }
 0x478   : > { %v2731_v11 = vpop.eup %2730  ;;  %v1668_v47 = vadd.f32 %v2727_v53, %v1667_v33 }
 0x479   : > { %v1687_v16 = vadd.f32 %v2729_v37, %v1686_v48  ;;  %v1704_v28 = vmul.f32 %v2731_v11, %v1702_v14  ;;  %v2733_v50 = vpop.eup %2732  ;;  %vm1709_vm0 = vweird.f32 %v2731_v11 }
 0x47a   : > { %v1672_v2 = vsel %vm1671_vm9, %v2727_v53, %v1668_v47  ;;  %vm1710_vm2 = vmor %vm1708_vm1, %vm1709_vm0 }
 0x47b   : > { %v1677_v17 = vsel %vm1674_vm11, %v1676_v12, %v1672_v2  ;;  %v1691_v39 = vsel %vm1690_vm10, %v2729_v37, %v1687_v16  ;;  %v1705_v45 = vsub.f32 1.0, %v1704_v28 }
 0x47c   : > { %v1696_v21 = vsel %vm1693_vm12, %v1695_v36, %v1691_v39  ;;  %v1722_v58 = vmul.f32 %v2733_v50, %v1677_v17 }
 0x47d   : > { %v1721_v59 = vmul.f32 %v1719_v29, %v1696_v21  ;;  %v1706_v8 = vmul.f32 %v2731_v11, %v1705_v45 }
 0x47f   : > { %v3948_v10 = vadd.f32 %v1722_v58, %v1721_v59  ;;  %v1707_v40 = vadd.f32 %v2731_v11, %v1706_v8 }
 0x481   : > { %2734 = vtanh.f32 %v3948_v10  ;;  %v1711_v15 = vsel %vm1710_vm2, %v2731_v11, %v1707_v40  ;;  %v1859_v17 = vrot.slane %v3948_v10, 6 }
 0x482   : > { %v1716_v54 = vsel %vm1713_vm13, %v1715_v24, %v1711_v15 }
 0x487   : > { %v2735_v46 = vpop.eup %2734 }
 0x488   : > { %v1725_v42 = vmul.f32 %v2735_v46, %v1716_v54 }
 0x48a   : > { %2507 = vst [vmem:[%s2849_s30] sm:$0xc] %v1725_v42  ;;  %v1728_v13 = vpack.c.bf16 %v1725_v42, %v1725_v42 }
 0x48c   : > { %v1730_v26 = vrot.slane %v1728_v13, 1 }
 0x48e   : > { %1740 = vmatmul.bf16.vlgmr.msrb.gmra.mxu0 %v1730_v26  ;;  %1753 = vmatmul.bf16.vlgmr.msrb.gmra.mxu1 %v1730_v26 }
 0x48f   : > { %1766 = vmatmul.bf16.vlgmr.msrb.gmra.mxu2 %v1730_v26  ;;  %1779 = vmatmul.bf16.vlgmr.msrb.gmra.mxu3 %v1730_v26 }
 0x50b   : > { %v1741_v51 = vpop.f32.mrf.mxu0  ;;  %v1754_v57 = vpop.f32.mrf.mxu1 }
 0x50c   : > { %v1788_v7 = vrot.slane %v1741_v51, 4  ;;  %v1789_v41 = vrot.slane %v1754_v57, 4 }
 0x50e   : > { %v1796_v43 = vadd.f32 %v1788_v7, %v3895_v18  ;;  %v1797_v49 = vadd.f32 %v1789_v41, %v3897_v35 }
 0x510   : > { %v2508_v61 = vmul.f32 -1.442695, %v1796_v43  ;;  %v2509_v5 = vmul.f32 -1.442695, %v1797_v49 }
 0x512   : > { %2736 = vpow2.f32 %v2508_v61  ;;  %v1767_v20 = vpop.f32.mrf.mxu2  ;;  %v1780_v38 = vpop.f32.mrf.mxu3 }
 0x513   : > { %2738 = vpow2.f32 %v2509_v5  ;;  %v1791_v4 = vrot.slane %v1780_v38, 4  ;;  %v1743_v30 = vpop.f32.mrf.mxu0  ;;  %v1756_v34 = vpop.f32.mrf.mxu1  ;;  %v1790_v22 = vrot.slane %v1767_v20, 4 }
 0x515   : > { %v1799_v6 = vadd.f32 %v1791_v4, %v3901_v63  ;;  %v1798_v44 = vadd.f32 %v1790_v22, %v3904_v52 }
 0x517   : > { %v2510_v25 = vmul.f32 -1.442695, %v1799_v6 }
 0x518   : > { %v2737_v55 = vpop.eup %2736 }
 0x519   : > { %v2739_v0 = vpop.eup %2738  ;;  %v1803_v1 = vadd.f32 1.0, %v2737_v55  ;;  %2740 = vpow2.f32 %v2510_v25 }
 0x51a   : > { %v1822_v19 = vadd.f32 1.0, %v2739_v0  ;;  %v1769_v14 = vpop.f32.mrf.mxu2  ;;  %v1782_v53 = vpop.f32.mrf.mxu3 }
 0x51b   : > { %2742 = vrcp.f32 %v1803_v1  ;;  %v1815_v48 = vand.u32 2147483648, %v1803_v1  ;;  %v1813_v47 = vand.u32 2147483647, %v1803_v1  ;;  %vm1809_vm3 = vweird.f32 %v1803_v1 }
 0x51c   : > { %2744 = vrcp.f32 %v1822_v19  ;;  %v1834_v56 = vand.u32 2147483648, %v1822_v19  ;;  %v1832_v16 = vand.u32 2147483647, %v1822_v19  ;;  %vm1828_vm4 = vweird.f32 %v1822_v19 }
 0x51d   : > { %v1816_v36 = vor.u32 1.1754944e-38, %v1815_v48  ;;  %vm1814_vm7 = vcmp.eq.f32.partialorder %v1813_v47, 8.507059e+37 }
 0x51e   : > { %v1835_v39 = vor.u32 1.1754944e-38, %v1834_v56  ;;  %vm1833_vm8 = vcmp.eq.f32.partialorder %v1832_v16, 8.507059e+37 }
 0x51f   : > { %v2741_v37 = vpop.eup %2740 }
 0x520   : > { %v1842_v27 = vadd.f32 1.0, %v2741_v37 }
 0x521   : > { %v2743_v32 = vpop.eup %2742 }
 0x522   : > { %v2745_v62 = vpop.eup %2744  ;;  %v1805_v3 = vmul.f32 %v2743_v32, %v1803_v1  ;;  %2746 = vrcp.f32 %v1842_v27  ;;  %vm1810_vm14 = vweird.f32 %v2743_v32  ;;  %v1854_v10 = vand.u32 2147483648, %v1842_v27 }
 0x523   : > { %v1824_v31 = vmul.f32 %v2745_v62, %v1822_v19  ;;  %2748 = vtanh.f32 %v1798_v44  ;;  %vm1829_vm15 = vweird.f32 %v2745_v62  ;;  %vm1811_vm5 = vmor %vm1809_vm3, %vm1810_vm14  ;;  %vm1848_vm10 = vweird.f32 %v1842_v27 }
 0x524   : > { %v1806_v33 = vsub.f32 1.0, %v1805_v3  ;;  %vm1830_vm6 = vmor %vm1828_vm4, %vm1829_vm15  ;;  %v1852_v54 = vand.u32 2147483647, %v1842_v27  ;;  %v1855_v13 = vor.u32 1.1754944e-38, %v1854_v10 }
 0x525   : > { %v1825_v60 = vsub.f32 1.0, %v1824_v31 }
 0x526   : > { %v1807_v11 = vmul.f32 %v2743_v32, %v1806_v33  ;;  %vm1853_vm12 = vcmp.eq.f32.partialorder %v1852_v54, 8.507059e+37 }
 0x527   : > { %v1826_v12 = vmul.f32 %v2745_v62, %v1825_v60 }
 0x528   : > { %v2747_v28 = vpop.eup %2746  ;;  %v1808_v29 = vadd.f32 %v2743_v32, %v1807_v11 }
 0x529   : > { %v1827_v2 = vadd.f32 %v2745_v62, %v1826_v12  ;;  %v1844_v50 = vmul.f32 %v2747_v28, %v1842_v27  ;;  %v2749_v21 = vpop.eup %2748  ;;  %vm1849_vm9 = vweird.f32 %v2747_v28 }
 0x52a   : > { %v1812_v45 = vsel %vm1811_vm5, %v2743_v32, %v1808_v29  ;;  %vm1850_vm11 = vmor %vm1848_vm10, %vm1849_vm9 }
 0x52b   : > { %v1817_v58 = vsel %vm1814_vm7, %v1816_v36, %v1812_v45  ;;  %v1831_v59 = vsel %vm1830_vm6, %v2745_v62, %v1827_v2  ;;  %v1845_v8 = vsub.f32 1.0, %v1844_v50 }
 0x52c   : > { %v1836_v40 = vsel %vm1833_vm8, %v1835_v39, %v1831_v59  ;;  %v1862_v23 = vmul.f32 %v2749_v21, %v1817_v58 }
 0x52d   : > { %v1861_v9 = vmul.f32 %v1859_v17, %v1836_v40  ;;  %v1846_v15 = vmul.f32 %v2747_v28, %v1845_v8 }
 0x52f   : > { %v3957_v24 = vadd.f32 %v1862_v23, %v1861_v9  ;;  %v1847_v46 = vadd.f32 %v2747_v28, %v1846_v15 }
 0x531   : > { %2750 = vtanh.f32 %v3957_v24  ;;  %v1851_v42 = vsel %vm1850_vm11, %v2747_v28, %v1847_v46  ;;  %v1999_v17 = vrot.slane %v3957_v24, 6 }
 0x532   : > { %v1856_v51 = vsel %vm1853_vm12, %v1855_v13, %v1851_v42 }
 0x537   : > { %v2751_v26 = vpop.eup %2750 }
 0x538   : > { %v1865_v57 = vmul.f32 %v2751_v26, %v1856_v51 }
 0x53a   : > { %2511 = vst [vmem:[%s2849_s30] sm:$0x30] %v1865_v57  ;;  %v1868_v7 = vpack.c.bf16 %v1865_v57, %v1865_v57 }
 0x53c   : > { %v1870_v41 = vrot.slane %v1868_v7, 2 }
 0x53e   : > { %1880 = vmatmul.bf16.vlgmr.msra.gmra.mxu0 %v1870_v41  ;;  %1893 = vmatmul.bf16.vlgmr.msra.gmra.mxu1 %v1870_v41 }
 0x53f   : > { %1906 = vmatmul.bf16.vlgmr.msra.gmra.mxu2 %v1870_v41  ;;  %1919 = vmatmul.bf16.vlgmr.msra.gmra.mxu3 %v1870_v41 }
 0x5bb   : > { %v1881_v43 = vpop.f32.mrf.mxu0  ;;  %v1894_v49 = vpop.f32.mrf.mxu1 }
 0x5bc   : > { %v1928_v61 = vrot.slane %v1881_v43, 2  ;;  %v1929_v5 = vrot.slane %v1894_v49, 2 }
 0x5be   : > { %v1936_v20 = vadd.f32 %v1928_v61, %v3895_v18  ;;  %v1937_v38 = vadd.f32 %v1929_v5, %v3897_v35 }
 0x5c0   : > { %v2512_v4 = vmul.f32 -1.442695, %v1936_v20  ;;  %v2513_v30 = vmul.f32 -1.442695, %v1937_v38 }
 0x5c2   : > { %2752 = vpow2.f32 %v2512_v4  ;;  %v1907_v34 = vpop.f32.mrf.mxu2  ;;  %v1920_v6 = vpop.f32.mrf.mxu3 }
 0x5c3   : > { %2754 = vpow2.f32 %v2513_v30  ;;  %v1931_v25 = vrot.slane %v1920_v6, 2  ;;  %v1883_v55 = vpop.f32.mrf.mxu0  ;;  %v1896_v0 = vpop.f32.mrf.mxu1  ;;  %v1930_v35 = vrot.slane %v1907_v34, 2 }
 0x5c5   : > { %v1939_v1 = vadd.f32 %v1931_v25, %v3901_v63  ;;  %v1938_v3 = vadd.f32 %v1930_v35, %v3904_v52 }
 0x5c7   : > { %v2514_v19 = vmul.f32 -1.442695, %v1939_v1 }
 0x5c8   : > { %v2753_v14 = vpop.eup %2752 }
 0x5c9   : > { %v2755_v53 = vpop.eup %2754  ;;  %v1943_v22 = vadd.f32 1.0, %v2753_v14  ;;  %2756 = vpow2.f32 %v2514_v19 }
 0x5ca   : > { %v1962_v37 = vadd.f32 1.0, %v2755_v53  ;;  %v1909_v18 = vpop.f32.mrf.mxu2  ;;  %v1922_v27 = vpop.f32.mrf.mxu3 }
 0x5cb   : > { %2758 = vrcp.f32 %v1943_v22  ;;  %v1955_v56 = vand.u32 2147483648, %v1943_v22  ;;  %v1953_v12 = vand.u32 2147483647, %v1943_v22  ;;  %vm1949_vm2 = vweird.f32 %v1943_v22 }
 0x5cc   : > { %2760 = vrcp.f32 %v1962_v37  ;;  %v1974_v11 = vand.u32 2147483648, %v1962_v37  ;;  %v1972_v28 = vand.u32 2147483647, %v1962_v37  ;;  %vm1968_vm13 = vweird.f32 %v1962_v37 }
 0x5cd   : > { %v1956_v52 = vor.u32 1.1754944e-38, %v1955_v56  ;;  %vm1954_vm3 = vcmp.eq.f32.partialorder %v1953_v12, 8.507059e+37 }
 0x5ce   : > { %v1975_v39 = vor.u32 1.1754944e-38, %v1974_v11  ;;  %vm1973_vm4 = vcmp.eq.f32.partialorder %v1972_v28, 8.507059e+37 }
 0x5cf   : > { %v2757_v32 = vpop.eup %2756 }
 0x5d0   : > { %v1982_v44 = vadd.f32 1.0, %v2757_v32 }
 0x5d1   : > { %v2759_v62 = vpop.eup %2758 }
 0x5d2   : > { %v2761_v31 = vpop.eup %2760  ;;  %v1945_v33 = vmul.f32 %v2759_v62, %v1943_v22  ;;  %2762 = vrcp.f32 %v1982_v44  ;;  %vm1950_vm0 = vweird.f32 %v2759_v62  ;;  %v1994_v24 = vand.u32 2147483648, %v1982_v44 }
 0x5d3   : > { %v1964_v63 = vmul.f32 %v2761_v31, %v1962_v37  ;;  %2764 = vtanh.f32 %v1938_v3  ;;  %vm1969_vm1 = vweird.f32 %v2761_v31  ;;  %vm1951_vm14 = vmor %vm1949_vm2, %vm1950_vm0  ;;  %vm1988_vm6 = vweird.f32 %v1982_v44 }
 0x5d4   : > { %v1946_v60 = vsub.f32 1.0, %v1945_v33  ;;  %vm1970_vm15 = vmor %vm1968_vm13, %vm1969_vm1  ;;  %v1992_v54 = vand.u32 2147483647, %v1982_v44  ;;  %v1995_v13 = vor.u32 1.1754944e-38, %v1994_v24 }
 0x5d5   : > { %v1965_v48 = vsub.f32 1.0, %v1964_v63 }
 0x5d6   : > { %v1947_v47 = vmul.f32 %v2759_v62, %v1946_v60  ;;  %vm1993_vm8 = vcmp.eq.f32.partialorder %v1992_v54, 8.507059e+37 }
 0x5d7   : > { %v1966_v16 = vmul.f32 %v2761_v31, %v1965_v48 }
 0x5d8   : > { %v2763_v29 = vpop.eup %2762  ;;  %v1948_v36 = vadd.f32 %v2759_v62, %v1947_v47 }
 0x5d9   : > { %v1967_v2 = vadd.f32 %v2761_v31, %v1966_v16  ;;  %v1984_v50 = vmul.f32 %v2763_v29, %v1982_v44  ;;  %v2765_v21 = vpop.eup %2764  ;;  %vm1989_vm5 = vweird.f32 %v2763_v29 }
 0x5da   : > { %v1952_v45 = vsel %vm1951_vm14, %v2759_v62, %v1948_v36  ;;  %vm1990_vm7 = vmor %vm1988_vm6, %vm1989_vm5 }
 0x5db   : > { %v1957_v58 = vsel %vm1954_vm3, %v1956_v52, %v1952_v45  ;;  %v1971_v59 = vsel %vm1970_vm15, %v2761_v31, %v1967_v2  ;;  %v1985_v8 = vsub.f32 1.0, %v1984_v50 }
 0x5dc   : > { %v1976_v40 = vsel %vm1973_vm4, %v1975_v39, %v1971_v59  ;;  %v2002_v23 = vmul.f32 %v2765_v21, %v1957_v58 }
 0x5dd   : > { %v2001_v9 = vmul.f32 %v1999_v17, %v1976_v40  ;;  %v1986_v15 = vmul.f32 %v2763_v29, %v1985_v8 }
 0x5df   : > { %v2003_v46 = vadd.f32 %v2002_v23, %v2001_v9  ;;  %v1987_v10 = vadd.f32 %v2763_v29, %v1986_v15 }
 0x5e1   : > { %2766 = vtanh.f32 %v2003_v46  ;;  %2009 = vst [vmem:[#allocation5 - $0x6] sm:$0xc0] %v2003_v46  ;;  %v1991_v42 = vsel %vm1990_vm7, %v2763_v29, %v1987_v10 }
 0x5e2   : > { %v1996_v51 = vsel %vm1993_vm8, %v1995_v13, %v1991_v42 }
 0x5e7   : > { %v2767_v26 = vpop.eup %2766 }
 0x5e8   : > { %v2005_v57 = vmul.f32 %v2767_v26, %v1996_v51 }
 0x5ea   : > { %2515 = vst [vmem:[%s2849_s30] sm:$0xc0] %v2005_v57 }
 0x5eb   : > { %2008 = vst [vmem:[#allocation4 - $0x6] sm:$0xc0] %v2005_v57 }
 0x5ec PF: > { %s15_s20 = sadd.s32 1, %s2790_s20   ;;  %s3990_s18 = smov %s2786_s19 }
 0x5ed   : > { %p12_p6 = scmp.ge.s32.totalorder %s15_s20, 4   ;;  %s3991_s19 = smov %s3993_s21 }
 0x5ef   :  { %14 = sbr.rel (!%p12_p6) target bundleno = 2 (0x2), region = 77 }

</bundles_post_ra>
